<compile_context>
chip_gen: v5e
topology: v5e:2x2
jax: 0.10.0
libtpu: 0.0.40
codegen_flags: <defaults>
</compile_context>

<pallas_src>
import functools

import jax
import jax.numpy as jnp
from jax import lax
from jax.experimental import pallas as pl
from jax.experimental.pallas import tpu as pltpu

MAX_LENGTH = 100  # self.max_length in the PyTorch module


def _round_up(x, m):
    return ((x + m - 1) // m) * m


def _pad_to(a, shape):
    return jnp.pad(a, [(0, t - s) for s, t in zip(a.shape, shape)])


def _gru_mlp_kernel(x_ref, w_in_ref, b_i_ref, w_h_ref, b_hn_ref,
                    w1_ref, b1_ref, w2_ref, b2_ref, out_ref, gates_ref,
                    *, S, H, GATE, B_PAD):
    # ---- hoisted loads / broadcasts (nothing in the loop re-reads weights) ----
    w_h = w_h_ref[...]                                           # (H, 3*GATE)
    b_hn = jnp.broadcast_to(b_hn_ref[0:1, :H], (B_PAD, H))       # hoisted broadcast

    # ---- all input-side gate projections (+ folded biases) in ONE matmul ----
    gates_ref[...] = (jnp.dot(x_ref[...], w_in_ref[...],
                              preferred_element_type=jnp.float32)
                      + b_i_ref[...])                            # (S*B_PAD, 3*GATE)

    # ---- latency-bound recurrence: one fused hidden-side matmul per step ----
    def step(l, hid):
        row = l * B_PAD
        if not isinstance(row, int):
            row = pl.multiple_of(row, B_PAD)
        g_i = gates_ref[pl.ds(row, B_PAD), :]                    # full (8,128)-tile reads
        g_h = jnp.dot(hid, w_h, preferred_element_type=jnp.float32)
        # each gate sits in its own 128-lane group -> no lane rotate vs. hid
        r_t = jax.nn.sigmoid(g_i[:, 0:H] + g_h[:, 0:H])
        z_t = jax.nn.sigmoid(g_i[:, GATE:GATE + H] + g_h[:, GATE:GATE + H])
        n_t = jnp.tanh(g_i[:, 2 * GATE:2 * GATE + H]
                       + r_t * (g_h[:, 2 * GATE:2 * GATE + H] + b_hn))
        return (1.0 - z_t) * n_t + z_t * hid

    hid = jnp.zeros((B_PAD, H), jnp.float32)
    if S <= 16:
        for l in range(S):                                       # fully static unroll
            hid = step(l, hid)
    else:
        # bounded vreg pressure / compile time for long sequences (S -> 100)
        hid = lax.fori_loop(0, S, step, hid, unroll=4)

    # ---- MLP head (lane-padded intermediates, full-tile output store) ----
    h1 = jnp.tanh(jnp.dot(hid, w1_ref[...],
                          preferred_element_type=jnp.float32) + b1_ref[...])
    out_ref[...] = (jnp.dot(h1, w2_ref[...],
                            preferred_element_type=jnp.float32) + b2_ref[...])


def make_params(key, max_words=1000, emb_size=100, hidden_size=64, num_classes=2):
    """Deterministic synthetic parameters, PyTorch-style shapes ((out, in), (out,))."""
    ks = jax.random.split(key, 9)
    s = 0.1
    H, E = hidden_size, emb_size
    return {
        "embedding": jax.random.normal(ks[0], (max_words, E), jnp.float32) * s,
        # cell_linear_in: Linear(E, 3H)
        "w_in": jax.random.normal(ks[1], (3 * H, E), jnp.float32) * s,
        "b_in": jax.random.normal(ks[2], (3 * H,), jnp.float32) * s,
        # cell_linear_hidden: Linear(H, 3H)
        "w_h": jax.random.normal(ks[3], (3 * H, H), jnp.float32) * s,
        "b_h": jax.random.normal(ks[4], (3 * H,), jnp.float32) * s,
        # fc1: Linear(H, 16), fc2: Linear(16, num_classes)
        "w1": jax.random.normal(ks[5], (16, H), jnp.float32) * s,
        "b1": jax.random.normal(ks[6], (16,), jnp.float32) * s,
        "w2": jax.random.normal(ks[7], (num_classes, 16), jnp.float32) * s,
        "b2": jax.random.normal(ks[8], (num_classes,), jnp.float32) * s,
    }


def prepare_params(params):
    """Pad / transpose / gate-pack parameters ONCE, outside the per-call path."""
    emb = params["embedding"].astype(jnp.float32)
    H = params["w_h"].shape[1]
    E = emb.shape[1]
    F1 = params["w1"].shape[0]
    C = params["w2"].shape[0]

    GATE = _round_up(H, 128)          # one 128-lane group per gate
    G_PAD = 3 * GATE
    E_PAD = _round_up(E, 128)
    F1_PAD = _round_up(F1, 128)
    C_PAD = _round_up(C, 128)

    def pack_gate_cols(mat_t):        # (in, 3H) -> (in, 3*GATE), gates lane-group aligned
        out = jnp.zeros((mat_t.shape[0], G_PAD), jnp.float32)
        for g in range(3):
            out = out.at[:, g * GATE:g * GATE + H].set(mat_t[:, g * H:(g + 1) * H])
        return out

    w_in_t = params["w_in"].T.astype(jnp.float32)       # (E, 3H)
    w_h_t = params["w_h"].T.astype(jnp.float32)         # (H, 3H)
    b_in = params["b_in"].astype(jnp.float32)
    b_h = params["b_h"].astype(jnp.float32)

    # fold b_h's r/z parts into the precomputed input-gate bias; keep b_h_n separate
    b_comb = jnp.concatenate([b_in[:2 * H] + b_h[:2 * H], b_in[2 * H:]])

    return {
        # static meta (python ints — closed over, never traced)
        "H": int(H), "GATE": int(GATE), "num_classes": int(C),
        # arrays (device-resident, lane-dense layouts, prepared once)
        "emb": emb,                                                   # exact gather source
        "w_in": _pad_to(pack_gate_cols(w_in_t), (E_PAD, G_PAD)),      # (E_PAD, 3*GATE)
        "b_i": pack_gate_cols(b_comb[None, :]),                       # (1, 3*GATE)
        "w_h": pack_gate_cols(w_h_t),                                 # (H, 3*GATE)
        "b_hn": _pad_to(b_h[2 * H:][None, :], (1, 128)),              # (1, 128)
        "w1": _pad_to(params["w1"].T.astype(jnp.float32), (H, F1_PAD)),
        "b1": _pad_to(params["b1"].astype(jnp.float32)[None, :], (1, F1_PAD)),
        "w2": _pad_to(params["w2"].T.astype(jnp.float32), (F1_PAD, C_PAD)),
        "b2": _pad_to(params["b2"].astype(jnp.float32)[None, :], (1, C_PAD)),
    }


def sigmod_forward(tokens, prep):
    H, GATE, C = prep["H"], prep["GATE"], prep["num_classes"]
    emb = prep["emb"]
    E = emb.shape[1]
    E_PAD = prep["w_in"].shape[0]
    G_PAD = prep["w_h"].shape[1]
    C_PAD = prep["b2"].shape[1]

    B, S = tokens.shape
    S_eff = min(S, MAX_LENGTH)                 # matches the `break` in the torch loop
    B_PAD = max(8, _round_up(B, 8))            # sublane-aligned batch rows per step

    # Exact embedding row gather (tiny), time-major and padded so row l*B_PAD+b
    # holds emb[tokens[b, l]]; each timestep is a contiguous full-tile slice.
    x = jnp.take(emb, tokens[:, :S_eff].astype(jnp.int32), axis=0)   # (B, S_eff, E)
    x = jnp.swapaxes(x, 0, 1)                                         # (S_eff, B, E)
    x = jnp.pad(x, ((0, 0), (0, B_PAD - B), (0, E_PAD - E)))
    x = x.reshape(S_eff * B_PAD, E_PAD)

    kernel = functools.partial(_gru_mlp_kernel, S=S_eff, H=H, GATE=GATE, B_PAD=B_PAD)
    vmem = pl.BlockSpec(memory_space=pltpu.MemorySpace.VMEM)
    args = (x, prep["w_in"], prep["b_i"], prep["w_h"], prep["b_hn"],
            prep["w1"], prep["b1"], prep["w2"], prep["b2"])

    out_padded = pl.pallas_call(
        kernel,
        out_shape=jax.ShapeDtypeStruct((B_PAD, C_PAD), jnp.float32),
        in_specs=[vmem] * len(args),
        out_specs=vmem,
        scratch_shapes=[pltpu.VMEM((S_eff * B_PAD, G_PAD), jnp.float32)],
    )(*args)
    return out_padded[:B, :C]


def sigmod_reference(tokens, params):
    """Pure-JAX reference mirroring the PyTorch forward exactly."""
    x = params["embedding"][tokens]                    # (B, S, E)
    B, S, _ = x.shape
    H = params["w_h"].shape[1]
    hid = jnp.zeros((B, H), jnp.float32)
    for l in range(min(S, MAX_LENGTH)):
        tmp_i = x[:, l, :] @ params["w_in"].T + params["b_in"]
        tmp_h = hid @ params["w_h"].T + params["b_h"]
        r_i, z_i, n_i = jnp.split(tmp_i, 3, axis=1)
        r_h, z_h, n_h = jnp.split(tmp_h, 3, axis=1)
        r_t = jax.nn.sigmoid(r_i + r_h)
        z_t = jax.nn.sigmoid(z_i + z_h)
        n_t = jnp.tanh(n_i + r_t * n_h)
        hid = (1.0 - z_t) * n_t + z_t * hid
    h1 = jnp.tanh(hid @ params["w1"].T + params["b1"])
    return h1 @ params["w2"].T + params["b2"]


if __name__ == "__main__":
    key = jax.random.PRNGKey(0)
    pkey, tkey = jax.random.split(key)

    MAX_WORDS = 1000
    B, S = 2, 8
    params = make_params(pkey, max_words=MAX_WORDS, emb_size=100,
                         hidden_size=64, num_classes=2)
    tokens = jax.random.randint(tkey, (B, S), 0, MAX_WORDS, dtype=jnp.int32)

    prep = prepare_params(params)                       # padded layouts prepared ONCE
    fwd = jax.jit(functools.partial(sigmod_forward, prep=prep))
    out = jax.block_until_ready(fwd(tokens))

    ref = sigmod_reference(tokens, params)
    assert out.shape == (B, 2), out.shape
    assert jnp.allclose(out, ref, atol=1e-4, rtol=1e-4), (out, ref)

    print("KERNEL_OK")
</pallas_src>

<mosaic_0001>
module attributes {stable_mosaic.version = 11 : i64} {
  func.func @_gru_mlp_kernel(%arg0: memref<64x128xf32, #tpu.memory_space<vmem>>, %arg1: memref<128x384xf32, #tpu.memory_space<vmem>>, %arg2: memref<1x384xf32, #tpu.memory_space<vmem>>, %arg3: memref<64x384xf32, #tpu.memory_space<vmem>>, %arg4: memref<1x128xf32, #tpu.memory_space<vmem>>, %arg5: memref<64x128xf32, #tpu.memory_space<vmem>>, %arg6: memref<1x128xf32, #tpu.memory_space<vmem>>, %arg7: memref<128x128xf32, #tpu.memory_space<vmem>>, %arg8: memref<1x128xf32, #tpu.memory_space<vmem>>, %arg9: memref<8x128xf32, #tpu.memory_space<vmem>>, %arg10: memref<64x384xf32, #tpu.memory_space<vmem>>) attributes {dimension_semantics = [], scalar_prefetch = 0 : i64, scratch_operands = 1 : i64, tpu.core_type = #tpu.core_type<tc>} {
    %c0 = arith.constant 0 : index
    %c0_0 = arith.constant 0 : index
    %0 = vector.load %arg3[%c0, %c0_0] : memref<64x384xf32, #tpu.memory_space<vmem>>, vector<64x384xf32>
    %c0_1 = arith.constant 0 : index
    %c0_2 = arith.constant 0 : index
    %1 = vector.load %arg4[%c0_1, %c0_2] : memref<1x128xf32, #tpu.memory_space<vmem>>, vector<1x64xf32>
    %2 = vector.shape_cast %1 : vector<1x64xf32> to vector<1x64xf32>
    %3 = vector.broadcast %2 : vector<1x64xf32> to vector<8x64xf32>
    %c0_3 = arith.constant 0 : index
    %c0_4 = arith.constant 0 : index
    %4 = vector.load %arg0[%c0_3, %c0_4] : memref<64x128xf32, #tpu.memory_space<vmem>>, vector<64x128xf32>
    %c0_5 = arith.constant 0 : index
    %c0_6 = arith.constant 0 : index
    %5 = vector.load %arg1[%c0_5, %c0_6] : memref<128x384xf32, #tpu.memory_space<vmem>>, vector<128x384xf32>
    %cst = arith.constant dense<0.000000e+00> : vector<64x384xf32>
    %6 = tpu.matmul %4, %5, %cst {dimension_numbers = #tpu.dot_dimension_numbers<[1], [0], [0], [1], [0, 0, 1, 1], [], []>} : vector<64x128xf32>, vector<128x384xf32>, vector<64x384xf32> -> vector<64x384xf32>
    %c0_7 = arith.constant 0 : index
    %c0_8 = arith.constant 0 : index
    %7 = vector.load %arg2[%c0_7, %c0_8] : memref<1x384xf32, #tpu.memory_space<vmem>>, vector<1x384xf32>
    %8 = vector.broadcast %7 : vector<1x384xf32> to vector<64x384xf32>
    %9 = arith.addf %6, %8 : vector<64x384xf32>
    %c0_9 = arith.constant 0 : index
    %c0_10 = arith.constant 0 : index
    %10 = vector.load %arg10[%c0_9, %c0_10] : memref<64x384xf32, #tpu.memory_space<vmem>>, vector<64x384xf32>
    tpu.vector_store %arg10[%c0_9, %c0_10], %9 {strides = array<i32>} : memref<64x384xf32, #tpu.memory_space<vmem>>, vector<64x384xf32>,
    %cst_11 = arith.constant 0.000000e+00 : f32
    %11 = vector.broadcast %cst_11 : f32 to vector<8x64xf32>
    %c0_12 = arith.constant 0 : index
    %c0_13 = arith.constant 0 : index
    %12 = vector.load %arg10[%c0_12, %c0_13] : memref<64x384xf32, #tpu.memory_space<vmem>>, vector<8x384xf32>
    %cst_14 = arith.constant dense<0.000000e+00> : vector<8x384xf32>
    %13 = tpu.matmul %11, %0, %cst_14 {dimension_numbers = #tpu.dot_dimension_numbers<[1], [0], [0], [1], [0, 0, 1, 1], [], []>} : vector<8x64xf32>, vector<64x384xf32>, vector<8x384xf32> -> vector<8x384xf32>
    %14 = vector.extract_strided_slice %12 {offsets = [0, 0], sizes = [8, 64], strides = [1, 1]} : vector<8x384xf32> to vector<8x64xf32>
    %15 = vector.extract_strided_slice %13 {offsets = [0, 0], sizes = [8, 64], strides = [1, 1]} : vector<8x384xf32> to vector<8x64xf32>
    %16 = arith.addf %14, %15 : vector<8x64xf32>
    %17 = arith.negf %16 : vector<8x64xf32>
    %18 = math.exp %17 : vector<8x64xf32>
    %cst_15 = arith.constant 1.000000e+00 : f32
    %19 = vector.broadcast %cst_15 : f32 to vector<8x64xf32>
    %20 = arith.addf %19, %18 : vector<8x64xf32>
    %21 = arith.divf %19, %20 : vector<8x64xf32>
    %22 = vector.extract_strided_slice %12 {offsets = [0, 128], sizes = [8, 64], strides = [1, 1]} : vector<8x384xf32> to vector<8x64xf32>
    %23 = vector.extract_strided_slice %13 {offsets = [0, 128], sizes = [8, 64], strides = [1, 1]} : vector<8x384xf32> to vector<8x64xf32>
    %24 = arith.addf %22, %23 : vector<8x64xf32>
    %25 = arith.negf %24 : vector<8x64xf32>
    %26 = math.exp %25 : vector<8x64xf32>
    %cst_16 = arith.constant 1.000000e+00 : f32
    %27 = vector.broadcast %cst_16 : f32 to vector<8x64xf32>
    %28 = arith.addf %27, %26 : vector<8x64xf32>
    %29 = arith.divf %27, %28 : vector<8x64xf32>
    %30 = vector.extract_strided_slice %12 {offsets = [0, 256], sizes = [8, 64], strides = [1, 1]} : vector<8x384xf32> to vector<8x64xf32>
    %31 = vector.extract_strided_slice %13 {offsets = [0, 256], sizes = [8, 64], strides = [1, 1]} : vector<8x384xf32> to vector<8x64xf32>
    %32 = arith.addf %31, %3 : vector<8x64xf32>
    %33 = arith.mulf %21, %32 : vector<8x64xf32>
    %34 = arith.addf %30, %33 : vector<8x64xf32>
    %35 = math.tanh %34 : vector<8x64xf32>
    %cst_17 = arith.constant 1.000000e+00 : f32
    %36 = vector.broadcast %cst_17 : f32 to vector<8x64xf32>
    %37 = arith.subf %36, %29 : vector<8x64xf32>
    %38 = arith.mulf %37, %35 : vector<8x64xf32>
    %39 = arith.mulf %29, %11 : vector<8x64xf32>
    %40 = arith.addf %38, %39 : vector<8x64xf32>
    %c8 = arith.constant 8 : index
    %c0_18 = arith.constant 0 : index
    %41 = vector.load %arg10[%c8, %c0_18] : memref<64x384xf32, #tpu.memory_space<vmem>>, vector<8x384xf32>
    %cst_19 = arith.constant dense<0.000000e+00> : vector<8x384xf32>
    %42 = tpu.matmul %40, %0, %cst_19 {dimension_numbers = #tpu.dot_dimension_numbers<[1], [0], [0], [1], [0, 0, 1, 1], [], []>} : vector<8x64xf32>, vector<64x384xf32>, vector<8x384xf32> -> vector<8x384xf32>
    %43 = vector.extract_strided_slice %41 {offsets = [0, 0], sizes = [8, 64], strides = [1, 1]} : vector<8x384xf32> to vector<8x64xf32>
    %44 = vector.extract_strided_slice %42 {offsets = [0, 0], sizes = [8, 64], strides = [1, 1]} : vector<8x384xf32> to vector<8x64xf32>
    %45 = arith.addf %43, %44 : vector<8x64xf32>
    %46 = arith.negf %45 : vector<8x64xf32>
    %47 = math.exp %46 : vector<8x64xf32>
    %cst_20 = arith.constant 1.000000e+00 : f32
    %48 = vector.broadcast %cst_20 : f32 to vector<8x64xf32>
    %49 = arith.addf %48, %47 : vector<8x64xf32>
    %50 = arith.divf %48, %49 : vector<8x64xf32>
    %51 = vector.extract_strided_slice %41 {offsets = [0, 128], sizes = [8, 64], strides = [1, 1]} : vector<8x384xf32> to vector<8x64xf32>
    %52 = vector.extract_strided_slice %42 {offsets = [0, 128], sizes = [8, 64], strides = [1, 1]} : vector<8x384xf32> to vector<8x64xf32>
    %53 = arith.addf %51, %52 : vector<8x64xf32>
    %54 = arith.negf %53 : vector<8x64xf32>
    %55 = math.exp %54 : vector<8x64xf32>
    %cst_21 = arith.constant 1.000000e+00 : f32
    %56 = vector.broadcast %cst_21 : f32 to vector<8x64xf32>
    %57 = arith.addf %56, %55 : vector<8x64xf32>
    %58 = arith.divf %56, %57 : vector<8x64xf32>
    %59 = vector.extract_strided_slice %41 {offsets = [0, 256], sizes = [8, 64], strides = [1, 1]} : vector<8x384xf32> to vector<8x64xf32>
    %60 = vector.extract_strided_slice %42 {offsets = [0, 256], sizes = [8, 64], strides = [1, 1]} : vector<8x384xf32> to vector<8x64xf32>
    %61 = arith.addf %60, %3 : vector<8x64xf32>
    %62 = arith.mulf %50, %61 : vector<8x64xf32>
    %63 = arith.addf %59, %62 : vector<8x64xf32>
    %64 = math.tanh %63 : vector<8x64xf32>
    %cst_22 = arith.constant 1.000000e+00 : f32
    %65 = vector.broadcast %cst_22 : f32 to vector<8x64xf32>
    %66 = arith.subf %65, %58 : vector<8x64xf32>
    %67 = arith.mulf %66, %64 : vector<8x64xf32>
    %68 = arith.mulf %58, %40 : vector<8x64xf32>
    %69 = arith.addf %67, %68 : vector<8x64xf32>
    %c16 = arith.constant 16 : index
    %c0_23 = arith.constant 0 : index
    %70 = vector.load %arg10[%c16, %c0_23] : memref<64x384xf32, #tpu.memory_space<vmem>>, vector<8x384xf32>
    %cst_24 = arith.constant dense<0.000000e+00> : vector<8x384xf32>
    %71 = tpu.matmul %69, %0, %cst_24 {dimension_numbers = #tpu.dot_dimension_numbers<[1], [0], [0], [1], [0, 0, 1, 1], [], []>} : vector<8x64xf32>, vector<64x384xf32>, vector<8x384xf32> -> vector<8x384xf32>
    %72 = vector.extract_strided_slice %70 {offsets = [0, 0], sizes = [8, 64], strides = [1, 1]} : vector<8x384xf32> to vector<8x64xf32>
    %73 = vector.extract_strided_slice %71 {offsets = [0, 0], sizes = [8, 64], strides = [1, 1]} : vector<8x384xf32> to vector<8x64xf32>
    %74 = arith.addf %72, %73 : vector<8x64xf32>
    %75 = arith.negf %74 : vector<8x64xf32>
    %76 = math.exp %75 : vector<8x64xf32>
    %cst_25 = arith.constant 1.000000e+00 : f32
    %77 = vector.broadcast %cst_25 : f32 to vector<8x64xf32>
    %78 = arith.addf %77, %76 : vector<8x64xf32>
    %79 = arith.divf %77, %78 : vector<8x64xf32>
    %80 = vector.extract_strided_slice %70 {offsets = [0, 128], sizes = [8, 64], strides = [1, 1]} : vector<8x384xf32> to vector<8x64xf32>
    %81 = vector.extract_strided_slice %71 {offsets = [0, 128], sizes = [8, 64], strides = [1, 1]} : vector<8x384xf32> to vector<8x64xf32>
    %82 = arith.addf %80, %81 : vector<8x64xf32>
    %83 = arith.negf %82 : vector<8x64xf32>
    %84 = math.exp %83 : vector<8x64xf32>
    %cst_26 = arith.constant 1.000000e+00 : f32
    %85 = vector.broadcast %cst_26 : f32 to vector<8x64xf32>
    %86 = arith.addf %85, %84 : vector<8x64xf32>
    %87 = arith.divf %85, %86 : vector<8x64xf32>
    %88 = vector.extract_strided_slice %70 {offsets = [0, 256], sizes = [8, 64], strides = [1, 1]} : vector<8x384xf32> to vector<8x64xf32>
    %89 = vector.extract_strided_slice %71 {offsets = [0, 256], sizes = [8, 64], strides = [1, 1]} : vector<8x384xf32> to vector<8x64xf32>
    %90 = arith.addf %89, %3 : vector<8x64xf32>
    %91 = arith.mulf %79, %90 : vector<8x64xf32>
    %92 = arith.addf %88, %91 : vector<8x64xf32>
    %93 = math.tanh %92 : vector<8x64xf32>
    %cst_27 = arith.constant 1.000000e+00 : f32
    %94 = vector.broadcast %cst_27 : f32 to vector<8x64xf32>
    %95 = arith.subf %94, %87 : vector<8x64xf32>
    %96 = arith.mulf %95, %93 : vector<8x64xf32>
    %97 = arith.mulf %87, %69 : vector<8x64xf32>
    %98 = arith.addf %96, %97 : vector<8x64xf32>
    %c24 = arith.constant 24 : index
    %c0_28 = arith.constant 0 : index
    %99 = vector.load %arg10[%c24, %c0_28] : memref<64x384xf32, #tpu.memory_space<vmem>>, vector<8x384xf32>
    %cst_29 = arith.constant dense<0.000000e+00> : vector<8x384xf32>
    %100 = tpu.matmul %98, %0, %cst_29 {dimension_numbers = #tpu.dot_dimension_numbers<[1], [0], [0], [1], [0, 0, 1, 1], [], []>} : vector<8x64xf32>, vector<64x384xf32>, vector<8x384xf32> -> vector<8x384xf32>
    %101 = vector.extract_strided_slice %99 {offsets = [0, 0], sizes = [8, 64], strides = [1, 1]} : vector<8x384xf32> to vector<8x64xf32>
    %102 = vector.extract_strided_slice %100 {offsets = [0, 0], sizes = [8, 64], strides = [1, 1]} : vector<8x384xf32> to vector<8x64xf32>
    %103 = arith.addf %101, %102 : vector<8x64xf32>
    %104 = arith.negf %103 : vector<8x64xf32>
    %105 = math.exp %104 : vector<8x64xf32>
    %cst_30 = arith.constant 1.000000e+00 : f32
    %106 = vector.broadcast %cst_30 : f32 to vector<8x64xf32>
    %107 = arith.addf %106, %105 : vector<8x64xf32>
    %108 = arith.divf %106, %107 : vector<8x64xf32>
    %109 = vector.extract_strided_slice %99 {offsets = [0, 128], sizes = [8, 64], strides = [1, 1]} : vector<8x384xf32> to vector<8x64xf32>
    %110 = vector.extract_strided_slice %100 {offsets = [0, 128], sizes = [8, 64], strides = [1, 1]} : vector<8x384xf32> to vector<8x64xf32>
    %111 = arith.addf %109, %110 : vector<8x64xf32>
    %112 = arith.negf %111 : vector<8x64xf32>
    %113 = math.exp %112 : vector<8x64xf32>
    %cst_31 = arith.constant 1.000000e+00 : f32
    %114 = vector.broadcast %cst_31 : f32 to vector<8x64xf32>
    %115 = arith.addf %114, %113 : vector<8x64xf32>
    %116 = arith.divf %114, %115 : vector<8x64xf32>
    %117 = vector.extract_strided_slice %99 {offsets = [0, 256], sizes = [8, 64], strides = [1, 1]} : vector<8x384xf32> to vector<8x64xf32>
    %118 = vector.extract_strided_slice %100 {offsets = [0, 256], sizes = [8, 64], strides = [1, 1]} : vector<8x384xf32> to vector<8x64xf32>
    %119 = arith.addf %118, %3 : vector<8x64xf32>
    %120 = arith.mulf %108, %119 : vector<8x64xf32>
    %121 = arith.addf %117, %120 : vector<8x64xf32>
    %122 = math.tanh %121 : vector<8x64xf32>
    %cst_32 = arith.constant 1.000000e+00 : f32
    %123 = vector.broadcast %cst_32 : f32 to vector<8x64xf32>
    %124 = arith.subf %123, %116 : vector<8x64xf32>
    %125 = arith.mulf %124, %122 : vector<8x64xf32>
    %126 = arith.mulf %116, %98 : vector<8x64xf32>
    %127 = arith.addf %125, %126 : vector<8x64xf32>
    %c32 = arith.constant 32 : index
    %c0_33 = arith.constant 0 : index
    %128 = vector.load %arg10[%c32, %c0_33] : memref<64x384xf32, #tpu.memory_space<vmem>>, vector<8x384xf32>
    %cst_34 = arith.constant dense<0.000000e+00> : vector<8x384xf32>
    %129 = tpu.matmul %127, %0, %cst_34 {dimension_numbers = #tpu.dot_dimension_numbers<[1], [0], [0], [1], [0, 0, 1, 1], [], []>} : vector<8x64xf32>, vector<64x384xf32>, vector<8x384xf32> -> vector<8x384xf32>
    %130 = vector.extract_strided_slice %128 {offsets = [0, 0], sizes = [8, 64], strides = [1, 1]} : vector<8x384xf32> to vector<8x64xf32>
    %131 = vector.extract_strided_slice %129 {offsets = [0, 0], sizes = [8, 64], strides = [1, 1]} : vector<8x384xf32> to vector<8x64xf32>
    %132 = arith.addf %130, %131 : vector<8x64xf32>
    %133 = arith.negf %132 : vector<8x64xf32>
    %134 = math.exp %133 : vector<8x64xf32>
    %cst_35 = arith.constant 1.000000e+00 : f32
    %135 = vector.broadcast %cst_35 : f32 to vector<8x64xf32>
    %136 = arith.addf %135, %134 : vector<8x64xf32>
    %137 = arith.divf %135, %136 : vector<8x64xf32>
    %138 = vector.extract_strided_slice %128 {offsets = [0, 128], sizes = [8, 64], strides = [1, 1]} : vector<8x384xf32> to vector<8x64xf32>
    %139 = vector.extract_strided_slice %129 {offsets = [0, 128], sizes = [8, 64], strides = [1, 1]} : vector<8x384xf32> to vector<8x64xf32>
    %140 = arith.addf %138, %139 : vector<8x64xf32>
    %141 = arith.negf %140 : vector<8x64xf32>
    %142 = math.exp %141 : vector<8x64xf32>
    %cst_36 = arith.constant 1.000000e+00 : f32
    %143 = vector.broadcast %cst_36 : f32 to vector<8x64xf32>
    %144 = arith.addf %143, %142 : vector<8x64xf32>
    %145 = arith.divf %143, %144 : vector<8x64xf32>
    %146 = vector.extract_strided_slice %128 {offsets = [0, 256], sizes = [8, 64], strides = [1, 1]} : vector<8x384xf32> to vector<8x64xf32>
    %147 = vector.extract_strided_slice %129 {offsets = [0, 256], sizes = [8, 64], strides = [1, 1]} : vector<8x384xf32> to vector<8x64xf32>
    %148 = arith.addf %147, %3 : vector<8x64xf32>
    %149 = arith.mulf %137, %148 : vector<8x64xf32>
    %150 = arith.addf %146, %149 : vector<8x64xf32>
    %151 = math.tanh %150 : vector<8x64xf32>
    %cst_37 = arith.constant 1.000000e+00 : f32
    %152 = vector.broadcast %cst_37 : f32 to vector<8x64xf32>
    %153 = arith.subf %152, %145 : vector<8x64xf32>
    %154 = arith.mulf %153, %151 : vector<8x64xf32>
    %155 = arith.mulf %145, %127 : vector<8x64xf32>
    %156 = arith.addf %154, %155 : vector<8x64xf32>
    %c40 = arith.constant 40 : index
    %c0_38 = arith.constant 0 : index
    %157 = vector.load %arg10[%c40, %c0_38] : memref<64x384xf32, #tpu.memory_space<vmem>>, vector<8x384xf32>
    %cst_39 = arith.constant dense<0.000000e+00> : vector<8x384xf32>
    %158 = tpu.matmul %156, %0, %cst_39 {dimension_numbers = #tpu.dot_dimension_numbers<[1], [0], [0], [1], [0, 0, 1, 1], [], []>} : vector<8x64xf32>, vector<64x384xf32>, vector<8x384xf32> -> vector<8x384xf32>
    %159 = vector.extract_strided_slice %157 {offsets = [0, 0], sizes = [8, 64], strides = [1, 1]} : vector<8x384xf32> to vector<8x64xf32>
    %160 = vector.extract_strided_slice %158 {offsets = [0, 0], sizes = [8, 64], strides = [1, 1]} : vector<8x384xf32> to vector<8x64xf32>
    %161 = arith.addf %159, %160 : vector<8x64xf32>
    %162 = arith.negf %161 : vector<8x64xf32>
    %163 = math.exp %162 : vector<8x64xf32>
    %cst_40 = arith.constant 1.000000e+00 : f32
    %164 = vector.broadcast %cst_40 : f32 to vector<8x64xf32>
    %165 = arith.addf %164, %163 : vector<8x64xf32>
    %166 = arith.divf %164, %165 : vector<8x64xf32>
    %167 = vector.extract_strided_slice %157 {offsets = [0, 128], sizes = [8, 64], strides = [1, 1]} : vector<8x384xf32> to vector<8x64xf32>
    %168 = vector.extract_strided_slice %158 {offsets = [0, 128], sizes = [8, 64], strides = [1, 1]} : vector<8x384xf32> to vector<8x64xf32>
    %169 = arith.addf %167, %168 : vector<8x64xf32>
    %170 = arith.negf %169 : vector<8x64xf32>
    %171 = math.exp %170 : vector<8x64xf32>
    %cst_41 = arith.constant 1.000000e+00 : f32
    %172 = vector.broadcast %cst_41 : f32 to vector<8x64xf32>
    %173 = arith.addf %172, %171 : vector<8x64xf32>
    %174 = arith.divf %172, %173 : vector<8x64xf32>
    %175 = vector.extract_strided_slice %157 {offsets = [0, 256], sizes = [8, 64], strides = [1, 1]} : vector<8x384xf32> to vector<8x64xf32>
    %176 = vector.extract_strided_slice %158 {offsets = [0, 256], sizes = [8, 64], strides = [1, 1]} : vector<8x384xf32> to vector<8x64xf32>
    %177 = arith.addf %176, %3 : vector<8x64xf32>
    %178 = arith.mulf %166, %177 : vector<8x64xf32>
    %179 = arith.addf %175, %178 : vector<8x64xf32>
    %180 = math.tanh %179 : vector<8x64xf32>
    %cst_42 = arith.constant 1.000000e+00 : f32
    %181 = vector.broadcast %cst_42 : f32 to vector<8x64xf32>
    %182 = arith.subf %181, %174 : vector<8x64xf32>
    %183 = arith.mulf %182, %180 : vector<8x64xf32>
    %184 = arith.mulf %174, %156 : vector<8x64xf32>
    %185 = arith.addf %183, %184 : vector<8x64xf32>
    %c48 = arith.constant 48 : index
    %c0_43 = arith.constant 0 : index
    %186 = vector.load %arg10[%c48, %c0_43] : memref<64x384xf32, #tpu.memory_space<vmem>>, vector<8x384xf32>
    %cst_44 = arith.constant dense<0.000000e+00> : vector<8x384xf32>
    %187 = tpu.matmul %185, %0, %cst_44 {dimension_numbers = #tpu.dot_dimension_numbers<[1], [0], [0], [1], [0, 0, 1, 1], [], []>} : vector<8x64xf32>, vector<64x384xf32>, vector<8x384xf32> -> vector<8x384xf32>
    %188 = vector.extract_strided_slice %186 {offsets = [0, 0], sizes = [8, 64], strides = [1, 1]} : vector<8x384xf32> to vector<8x64xf32>
    %189 = vector.extract_strided_slice %187 {offsets = [0, 0], sizes = [8, 64], strides = [1, 1]} : vector<8x384xf32> to vector<8x64xf32>
    %190 = arith.addf %188, %189 : vector<8x64xf32>
    %191 = arith.negf %190 : vector<8x64xf32>
    %192 = math.exp %191 : vector<8x64xf32>
    %cst_45 = arith.constant 1.000000e+00 : f32
    %193 = vector.broadcast %cst_45 : f32 to vector<8x64xf32>
    %194 = arith.addf %193, %192 : vector<8x64xf32>
    %195 = arith.divf %193, %194 : vector<8x64xf32>
    %196 = vector.extract_strided_slice %186 {offsets = [0, 128], sizes = [8, 64], strides = [1, 1]} : vector<8x384xf32> to vector<8x64xf32>
    %197 = vector.extract_strided_slice %187 {offsets = [0, 128], sizes = [8, 64], strides = [1, 1]} : vector<8x384xf32> to vector<8x64xf32>
    %198 = arith.addf %196, %197 : vector<8x64xf32>
    %199 = arith.negf %198 : vector<8x64xf32>
    %200 = math.exp %199 : vector<8x64xf32>
    %cst_46 = arith.constant 1.000000e+00 : f32
    %201 = vector.broadcast %cst_46 : f32 to vector<8x64xf32>
    %202 = arith.addf %201, %200 : vector<8x64xf32>
    %203 = arith.divf %201, %202 : vector<8x64xf32>
    %204 = vector.extract_strided_slice %186 {offsets = [0, 256], sizes = [8, 64], strides = [1, 1]} : vector<8x384xf32> to vector<8x64xf32>
    %205 = vector.extract_strided_slice %187 {offsets = [0, 256], sizes = [8, 64], strides = [1, 1]} : vector<8x384xf32> to vector<8x64xf32>
    %206 = arith.addf %205, %3 : vector<8x64xf32>
    %207 = arith.mulf %195, %206 : vector<8x64xf32>
    %208 = arith.addf %204, %207 : vector<8x64xf32>
    %209 = math.tanh %208 : vector<8x64xf32>
    %cst_47 = arith.constant 1.000000e+00 : f32
    %210 = vector.broadcast %cst_47 : f32 to vector<8x64xf32>
    %211 = arith.subf %210, %203 : vector<8x64xf32>
    %212 = arith.mulf %211, %209 : vector<8x64xf32>
    %213 = arith.mulf %203, %185 : vector<8x64xf32>
    %214 = arith.addf %212, %213 : vector<8x64xf32>
    %c56 = arith.constant 56 : index
    %c0_48 = arith.constant 0 : index
    %215 = vector.load %arg10[%c56, %c0_48] : memref<64x384xf32, #tpu.memory_space<vmem>>, vector<8x384xf32>
    %cst_49 = arith.constant dense<0.000000e+00> : vector<8x384xf32>
    %216 = tpu.matmul %214, %0, %cst_49 {dimension_numbers = #tpu.dot_dimension_numbers<[1], [0], [0], [1], [0, 0, 1, 1], [], []>} : vector<8x64xf32>, vector<64x384xf32>, vector<8x384xf32> -> vector<8x384xf32>
    %217 = vector.extract_strided_slice %215 {offsets = [0, 0], sizes = [8, 64], strides = [1, 1]} : vector<8x384xf32> to vector<8x64xf32>
    %218 = vector.extract_strided_slice %216 {offsets = [0, 0], sizes = [8, 64], strides = [1, 1]} : vector<8x384xf32> to vector<8x64xf32>
    %219 = arith.addf %217, %218 : vector<8x64xf32>
    %220 = arith.negf %219 : vector<8x64xf32>
    %221 = math.exp %220 : vector<8x64xf32>
    %cst_50 = arith.constant 1.000000e+00 : f32
    %222 = vector.broadcast %cst_50 : f32 to vector<8x64xf32>
    %223 = arith.addf %222, %221 : vector<8x64xf32>
    %224 = arith.divf %222, %223 : vector<8x64xf32>
    %225 = vector.extract_strided_slice %215 {offsets = [0, 128], sizes = [8, 64], strides = [1, 1]} : vector<8x384xf32> to vector<8x64xf32>
    %226 = vector.extract_strided_slice %216 {offsets = [0, 128], sizes = [8, 64], strides = [1, 1]} : vector<8x384xf32> to vector<8x64xf32>
    %227 = arith.addf %225, %226 : vector<8x64xf32>
    %228 = arith.negf %227 : vector<8x64xf32>
    %229 = math.exp %228 : vector<8x64xf32>
    %cst_51 = arith.constant 1.000000e+00 : f32
    %230 = vector.broadcast %cst_51 : f32 to vector<8x64xf32>
    %231 = arith.addf %230, %229 : vector<8x64xf32>
    %232 = arith.divf %230, %231 : vector<8x64xf32>
    %233 = vector.extract_strided_slice %215 {offsets = [0, 256], sizes = [8, 64], strides = [1, 1]} : vector<8x384xf32> to vector<8x64xf32>
    %234 = vector.extract_strided_slice %216 {offsets = [0, 256], sizes = [8, 64], strides = [1, 1]} : vector<8x384xf32> to vector<8x64xf32>
    %235 = arith.addf %234, %3 : vector<8x64xf32>
    %236 = arith.mulf %224, %235 : vector<8x64xf32>
    %237 = arith.addf %233, %236 : vector<8x64xf32>
    %238 = math.tanh %237 : vector<8x64xf32>
    %cst_52 = arith.constant 1.000000e+00 : f32
    %239 = vector.broadcast %cst_52 : f32 to vector<8x64xf32>
    %240 = arith.subf %239, %232 : vector<8x64xf32>
    %241 = arith.mulf %240, %238 : vector<8x64xf32>
    %242 = arith.mulf %232, %214 : vector<8x64xf32>
    %243 = arith.addf %241, %242 : vector<8x64xf32>
    %c0_53 = arith.constant 0 : index
    %c0_54 = arith.constant 0 : index
    %244 = vector.load %arg5[%c0_53, %c0_54] : memref<64x128xf32, #tpu.memory_space<vmem>>, vector<64x128xf32>
    %cst_55 = arith.constant dense<0.000000e+00> : vector<8x128xf32>
    %245 = tpu.matmul %243, %244, %cst_55 {dimension_numbers = #tpu.dot_dimension_numbers<[1], [0], [0], [1], [0, 0, 1, 1], [], []>} : vector<8x64xf32>, vector<64x128xf32>, vector<8x128xf32> -> vector<8x128xf32>
    %c0_56 = arith.constant 0 : index
    %c0_57 = arith.constant 0 : index
    %246 = vector.load %arg6[%c0_56, %c0_57] : memref<1x128xf32, #tpu.memory_space<vmem>>, vector<1x128xf32>
    %247 = vector.broadcast %246 : vector<1x128xf32> to vector<8x128xf32>
    %248 = arith.addf %245, %247 : vector<8x128xf32>
    %249 = math.tanh %248 : vector<8x128xf32>
    %c0_58 = arith.constant 0 : index
    %c0_59 = arith.constant 0 : index
    %250 = vector.load %arg7[%c0_58, %c0_59] : memref<128x128xf32, #tpu.memory_space<vmem>>, vector<128x128xf32>
    %cst_60 = arith.constant dense<0.000000e+00> : vector<8x128xf32>
    %251 = tpu.matmul %249, %250, %cst_60 {dimension_numbers = #tpu.dot_dimension_numbers<[1], [0], [0], [1], [0, 0, 1, 1], [], []>} : vector<8x128xf32>, vector<128x128xf32>, vector<8x128xf32> -> vector<8x128xf32>
    %c0_61 = arith.constant 0 : index
    %c0_62 = arith.constant 0 : index
    %252 = vector.load %arg8[%c0_61, %c0_62] : memref<1x128xf32, #tpu.memory_space<vmem>>, vector<1x128xf32>
    %253 = vector.broadcast %252 : vector<1x128xf32> to vector<8x128xf32>
    %254 = arith.addf %251, %253 : vector<8x128xf32>
    %c0_63 = arith.constant 0 : index
    %c0_64 = arith.constant 0 : index
    %255 = vector.load %arg9[%c0_63, %c0_64] : memref<8x128xf32, #tpu.memory_space<vmem>>, vector<8x128xf32>
    tpu.vector_store %arg9[%c0_63, %c0_64], %254 {strides = array<i32>} : memref<8x128xf32, #tpu.memory_space<vmem>>, vector<8x128xf32>,
    return
  }
}

</mosaic_0001>

<bundles_post_ra>
// kernel: sigmod_forward.1
= control target key start
LH: loop header
LB: loop body
LE: loop exit
PB: predicated region body
PF: predicated region fallthrough
CT: control target
= control target key end

     0   :  { %14 = vsyncpa [#allocation4], 0  ;;  %s2134_s0 = inlined_call_operand.vmem [shape: f32[64,128], index: 0, kind: input, shape index: {}]   ;;  %s2135_s1 = inlined_call_operand.hbm [shape: f32[128,384], index: 1, kind: input, shape index: {}]   ;;  %s2136_s2 = inlined_call_operand.vmem [shape: f32[1,384], index: 2, kind: input, shape index: {}]   ;;  %s2137_s3 = inlined_call_operand.vmem [shape: f32[64,384], index: 3, kind: input, shape index: {}]   ;;  %s2138_s4 = inlined_call_operand.vmem [shape: f32[1,128], index: 4, kind: input, shape index: {}]   ;;  %s2139_s5 = inlined_call_operand.vmem [shape: f32[64,128], index: 5, kind: input, shape index: {}]   ;;  %s2140_s6 = inlined_call_operand.vmem [shape: f32[1,128], index: 6, kind: input, shape index: {}]   ;;  %s2141_s7 = inlined_call_operand.hbm [shape: f32[128,128], index: 7, kind: input, shape index: {}]   ;;  %s2142_s8 = inlined_call_operand.vmem [shape: f32[1,128], index: 8, kind: input, shape index: {}]   ;;  %s2143_s9 = inlined_call_operand.vmem [shape: f32[8,128], index: 9, kind: output, shape index: {}]  }
   0x1   :  { %s22_s11 = sshll.u32 %s2135_s1, 4  ;;  %s23_s11 = int_to_ptr.hbm [resolvable:$true] %s22_s11 }
   0x2   :  { %15 = vsyncpa [#allocation6], 0  ;;  %s1504_s12 = smov [#allocation3]   ;;  %s45_s16 = sshll.u32 %s2141_s7, 4  ;;  %s46_s16 = int_to_ptr.hbm [resolvable:$true] %s45_s16 }
   0x3   :  { %s24_s13 = sshll.u32 %s1504_s12, 4  ;;  %s1505_s17 = smov 384   ;;  %s25_s13 = int_to_ptr.vmem [resolvable:$true] %s24_s13 }
   0x4   :  { %s1506_s18 = smov 24   ;;  %s1507_s19 = smov [#allocation5]  }
   0x5   :  { %30 = dma.hbm_to_vmem [thread:$0]  %s23_s11, 6144, %s25_s13, [#allocation4], %s1505_s17, %s1505_s17, %s1506_s18  }
   0x6   :  { %s47_s20 = sshll.u32 %s1507_s19, 4  ;;  %s1508_s21 = smov 128   ;;  %s48_s20 = int_to_ptr.vmem [resolvable:$true] %s47_s20 }
   0x7   :  { %s1509_s22 = smov 8  }
   0x8   :  { %53 = dma.hbm_to_vmem [thread:$0]  %s46_s16, 2048, %s48_s20, [#allocation6], %s1508_s21, %s1508_s21, %s1509_s22  }
   0x9   :  { %1500 = dma.done.wait [#allocation4], 6144  }
   0xa   :  { %1501 = vsyncadd [#allocation4], 4294961152 }
   0xb   :  { %1502 = dma.done.wait [#allocation6], 2048  }
   0xc   :  { %1503 = vsyncadd [#allocation6], 4294965248  ;;  %v145_v0 = vld [vmem:[#allocation3 + $0x168] sm:$0xff]  ;;  %v142_v2 = vld [vmem:[#allocation3 + $0x150] sm:$0xff]  ;;  %v1510_v33 = vmov 0.0   ;;  %vm306_vm8 = vcmask 523264  }
   0xd   :  { %v1570_v1 = vld [vmem:[%s2137_s3 + $0xa8] sm:$0xff]  ;;  %156 = vmatpush.msra.mxu0 %v145_v0  ;;  %v1576_v3 = vld [vmem:[%s2137_s3 + $0x90] sm:$0xff]  ;;  %v139_v5 = vld [vmem:[#allocation3 + $0x138] sm:$0xff] }
   0xe   :  { %318 = vmatpush.msra.mxu3 %v1570_v1  ;;  %v146_v4 = vld [vmem:[#allocation3 + $0x170] sm:$0xff]  ;;  %v1581_v6 = vld [vmem:[%s2137_s3 + $0x78] sm:$0xff]  ;;  %v140_v8 = vld [vmem:[#allocation3 + $0x140] sm:$0xff] }
   0xf   :  { %197 = vmatpush.msra.mxu1 %v146_v4  ;;  %v143_v7 = vld [vmem:[#allocation3 + $0x158] sm:$0xff]  ;;  %157 = vmatpush.msra.mxu0 %v142_v2  ;;  %v136_v9 = vld [vmem:[#allocation3 + $0x120] sm:$0xff]  ;;  %v137_v11 = vld [vmem:[#allocation3 + $0x128] sm:$0xff] }
  0x10   :  { %319 = vmatpush.msra.mxu3 %v1576_v3  ;;  %v1587_v10 = vld [vmem:[%s2137_s3 + $0x60] sm:$0xff]  ;;  %v133_v12 = vld [vmem:[#allocation3 + $0x108] sm:$0xff]  ;;  %v134_v14 = vld [vmem:[#allocation3 + $0x110] sm:$0xff] }
  0x11   :  { %198 = vmatpush.msra.mxu1 %v143_v7  ;;  %158 = vmatpush.msra.mxu0 %v139_v5  ;;  %v1593_v13 = vld [vmem:[%s2137_s3 + $0x48] sm:$0xff]  ;;  %v130_v15 = vld [vmem:[#allocation3 + $0xf0] sm:$0xff]  ;;  %v131_v17 = vld [vmem:[#allocation3 + $0xf8] sm:$0xff] }
  0x12   :  { %320 = vmatpush.msra.mxu3 %v1581_v6  ;;  %v1599_v16 = vld [vmem:[%s2137_s3 + $0x30] sm:$0xff]  ;;  %v127_v18 = vld [vmem:[#allocation3 + $0xd8] sm:$0xff]  ;;  %v128_v20 = vld [vmem:[#allocation3 + $0xe0] sm:$0xff] }
  0x13   :  { %199 = vmatpush.msra.mxu1 %v140_v8  ;;  %159 = vmatpush.msra.mxu0 %v136_v9  ;;  %v1605_v19 = vld [vmem:[%s2137_s3 + $0x18] sm:$0xff]  ;;  %v124_v21 = vld [vmem:[#allocation3 + $0xc0] sm:$0xff]  ;;  %v1617_v23 = vld [vmem:[%s2137_s3 + $0xb0] sm:$0xff] }
  0x14   :  { %321 = vmatpush.msra.mxu3 %v1587_v10  ;;  %v1611_v22 = vld [vmem:[%s2137_s3] sm:$0xff]  ;;  %v125_v24 = vld [vmem:[#allocation3 + $0xc8] sm:$0xff]  ;;  %v147_v25 = vld [vmem:[#allocation3 + $0x178] sm:$0xff] }
  0x15   :  { %200 = vmatpush.msra.mxu1 %v137_v11  ;;  %160 = vmatpush.msra.mxu0 %v133_v12  ;;  %v121_v26 = vld [vmem:[#allocation3 + $0xa8] sm:$0xff]  ;;  %v1623_v27 = vld [vmem:[%s2137_s3 + $0x98] sm:$0xff]  ;;  %v122_v28 = vld [vmem:[#allocation3 + $0xb0] sm:$0xff] }
  0x16   :  { %322 = vmatpush.msra.mxu3 %v1593_v13  ;;  %238 = vmatpush.msra.mxu2 %v147_v25  ;;  %v118_v29 = vld [vmem:[#allocation3 + $0x90] sm:$0xff]  ;;  %v144_v30 = vld [vmem:[#allocation3 + $0x160] sm:$0xff]  ;;  %v119_v32 = vld [vmem:[#allocation3 + $0x98] sm:$0xff] }
  0x17   :  { %201 = vmatpush.msra.mxu1 %v134_v14  ;;  %161 = vmatpush.msra.mxu0 %v130_v15  ;;  %v1629_v31 = vld [vmem:[%s2137_s3 + $0x80] sm:$0xff]  ;;  %v115_v34 = vld [vmem:[#allocation3 + $0x78] sm:$0xff]  ;;  %v141_v35 = vld [vmem:[#allocation3 + $0x148] sm:$0xff] }
  0x18   :  { %323 = vmatpush.msra.mxu3 %v1599_v16  ;;  %v1636_v36 = vld [vmem:[%s2137_s3 + $0x68] sm:$0xff]  ;;  %v116_v37 = vld [vmem:[#allocation3 + $0x80] sm:$0xff]  ;;  %239 = vmatpush.msra.mxu2 %v144_v30  ;;  %v138_v39 = vld [vmem:[#allocation3 + $0x130] sm:$0xff] }
  0x19   :  { %202 = vmatpush.msra.mxu1 %v131_v17  ;;  %162 = vmatpush.msra.mxu0 %v127_v18  ;;  %v112_v38 = vld [vmem:[#allocation3 + $0x60] sm:$0xff]  ;;  %v1642_v40 = vld [vmem:[%s2137_s3 + $0x50] sm:$0xff]  ;;  %v113_v41 = vld [vmem:[#allocation3 + $0x68] sm:$0xff] }
  0x1a   :  { %324 = vmatpush.msra.mxu3 %v1605_v19  ;;  %240 = vmatpush.msra.mxu2 %v141_v35  ;;  %v109_v42 = vld [vmem:[#allocation3 + $0x48] sm:$0xff]  ;;  %v135_v43 = vld [vmem:[#allocation3 + $0x118] sm:$0xff]  ;;  %v106_v45 = vld [vmem:[#allocation3 + $0x30] sm:$0xff] }
  0x1b   :  { %203 = vmatpush.msra.mxu1 %v128_v20  ;;  %163 = vmatpush.msra.mxu0 %v124_v21  ;;  %v1648_v44 = vld [vmem:[%s2137_s3 + $0x38] sm:$0xff]  ;;  %v110_v46 = vld [vmem:[#allocation3 + $0x50] sm:$0xff]  ;;  %v1654_v47 = vld [vmem:[%s2137_s3 + $0x20] sm:$0xff] }
  0x1c   :  { %325 = vmatpush.msra.mxu3 %v1611_v22  ;;  %241 = vmatpush.msra.mxu2 %v138_v39  ;;  %v132_v48 = vld [vmem:[#allocation3 + $0x100] sm:$0xff]  ;;  %v107_v49 = vld [vmem:[#allocation3 + $0x38] sm:$0xff]  ;;  %v129_v51 = vld [vmem:[#allocation3 + $0xe8] sm:$0xff] }
  0x1d   :  { %204 = vmatpush.msra.mxu1 %v125_v24  ;;  %164 = vmatpush.msra.mxu0 %v121_v26  ;;  %v103_v50 = vld [vmem:[#allocation3 + $0x18] sm:$0xff]  ;;  %v1660_v52 = vld [vmem:[%s2137_s3 + $0x8] sm:$0xff]  ;;  %v104_v53 = vld [vmem:[#allocation3 + $0x20] sm:$0xff] }
  0x1e   :  { %338 = vmatpush.msrb.mxu3 %v1617_v23  ;;  %242 = vmatpush.msra.mxu2 %v135_v43  ;;  %v100_v54 = vld [vmem:[#allocation3] sm:$0xff]  ;;  %v101_v56 = vld [vmem:[#allocation3 + $0x8] sm:$0xff]  ;;  %v126_v57 = vld [vmem:[#allocation3 + $0xd0] sm:$0xff] }
  0x1f   :  { %326 = vmatmul.f32.vlgmr.msra.gmra.mxu3 %v1510_v33  ;;  %205 = vmatpush.msra.mxu1 %v122_v28  ;;  %v92_v55 = vld [vmem:[%s2134_s0] sm:$0xff]  ;;  %v1671_v58 = vld [vmem:[%s2137_s3 + $0xb8] sm:$0xff]  ;;  %v1683_v62 = vld [vmem:[%s2137_s3 + $0x88] sm:$0xff] }
  0x20   :  { %339 = vmatpush.msrb.mxu3 %v1623_v27  ;;  %165 = vmatpush.msra.mxu0 %v118_v29  ;;  %v123_v59 = vld [vmem:[#allocation3 + $0xb8] sm:$0xff]  ;;  %v1676_v60 = vld [vmem:[%s2137_s3 + $0xa0] sm:$0xff]  ;;  %v117_v63 = vld [vmem:[#allocation3 + $0x88] sm:$0xff] }
  0x21   :  { %206 = vmatpush.msra.mxu1 %v119_v32  ;;  %243 = vmatpush.msra.mxu2 %v132_v48  ;;  %v120_v61 = vld [vmem:[#allocation3 + $0xa0] sm:$0xff]  ;;  %v1691_v0 = vld [vmem:[%s2137_s3 + $0x70] sm:$0xff]  ;;  %v93_v4 = vld [vmem:[%s2134_s0 + $0x8] sm:$0xff] }
  0x22   :  { %340 = vmatpush.msrb.mxu3 %v1629_v31  ;;  %166 = vmatpush.msra.mxu0 %v115_v34  ;;  %v114_v2 = vld [vmem:[#allocation3 + $0x70] sm:$0xff]  ;;  %v1702_v5 = vld [vmem:[%s2137_s3 + $0x58] sm:$0xff]  ;;  %v1710_v8 = vld [vmem:[%s2137_s3 + $0x40] sm:$0xff] }
  0x23   :  { %207 = vmatpush.msra.mxu1 %v116_v37  ;;  %244 = vmatpush.msra.mxu2 %v129_v51  ;;  %v111_v7 = vld [vmem:[#allocation3 + $0x58] sm:$0xff]  ;;  %v108_v9 = vld [vmem:[#allocation3 + $0x40] sm:$0xff]  ;;  %v1717_v11 = vld [vmem:[%s2137_s3 + $0x28] sm:$0xff] }
  0x24   :  { %341 = vmatpush.msrb.mxu3 %v1636_v36  ;;  %167 = vmatpush.msra.mxu0 %v112_v38  ;;  %v105_v12 = vld [vmem:[#allocation3 + $0x28] sm:$0xff]  ;;  %v1724_v14 = vld [vmem:[%s2137_s3 + $0x10] sm:$0xff]  ;;  %v95_v18 = vld [vmem:[%s2134_s0 + $0x18] sm:$0xff] }
  0x25   :  { %208 = vmatpush.msra.mxu1 %v113_v41  ;;  %245 = vmatpush.msra.mxu2 %v126_v57  ;;  %v102_v15 = vld [vmem:[#allocation3 + $0x10] sm:$0xff]  ;;  %v96_v20 = vld [vmem:[%s2134_s0 + $0x20] sm:$0xff]  ;;  %v97_v21 = vld [vmem:[%s2134_s0 + $0x28] sm:$0xff] }
  0x26   :  { %342 = vmatpush.msrb.mxu3 %v1642_v40  ;;  %168 = vmatpush.msra.mxu0 %v109_v42  ;;  %v94_v17 = vld [vmem:[%s2134_s0 + $0x10] sm:$0xff]  ;;  %v148_v24 = vld [vmem:[%s2136_s2] sm:$0x7]  ;;  %v99_v41 = vld [vmem:[%s2134_s0 + $0x38] sm:$0xff] }
  0x27   :  { %209 = vmatpush.msra.mxu1 %v110_v46  ;;  %246 = vmatpush.msra.mxu2 %v123_v59  ;;  %v1799_v26 = vperm.slane %v148_v24, 0  ;;  %v1801_v28 = vperm.slane %v148_v24, 1  ;;  %v98_v29 = vld [vmem:[%s2134_s0 + $0x30] sm:$0xff] }
  0x28   :  { %343 = vmatpush.msrb.mxu3 %v1648_v44  ;;  %169 = vmatpush.msra.mxu0 %v106_v45 }
  0x29   :  { %210 = vmatpush.msra.mxu1 %v107_v49  ;;  %247 = vmatpush.msra.mxu2 %v120_v61 }
  0x2a   :  { %344 = vmatpush.msrb.mxu3 %v1654_v47  ;;  %170 = vmatpush.msra.mxu0 %v103_v50 }
  0x2b   :  { %211 = vmatpush.msra.mxu1 %v104_v53  ;;  %248 = vmatpush.msra.mxu2 %v117_v63  ;;  %v1814_v53 = vld [vmem:[%s2138_s4] ss:$0 sm:$0xff]  ;;  %v1816_v63 = vperm.slane %v148_v24, 2 }
  0x2c   :  { %345 = vmatpush.msrb.mxu3 %v1660_v52  ;;  %171 = vmatpush.msra.mxu0 %v100_v54 }
  0x2d   :  { %346 = vmatmul.f32.vlgmr.msrb.gmra.mxu3 %v1510_v33  ;;  %172 = vmatmul.f32.vlgmr.msra.gmra.mxu0 %v92_v55 }
  0x2e   :  { %212 = vmatpush.msra.mxu1 %v101_v56  ;;  %358 = vmatpush.msra.mxu3 %v1671_v58 }
  0x2f   :  { %213 = vmatmul.f32.vlgmr.msra.gmra.mxu1 %v92_v55  ;;  %660 = vmatpush.msrb.mxu0 %v1570_v1 }
  0x30   :  { %472 = vmatpush.msrb.mxu1 %v1671_v58  ;;  %359 = vmatpush.msra.mxu3 %v1676_v60 }
  0x31   :  { %661 = vmatpush.msrb.mxu0 %v1576_v3  ;;  %249 = vmatpush.msra.mxu2 %v114_v2 }
  0x32   :  { %473 = vmatpush.msrb.mxu1 %v1676_v60  ;;  %360 = vmatpush.msra.mxu3 %v1683_v62 }
  0x33   :  { %662 = vmatpush.msrb.mxu0 %v1581_v6  ;;  %250 = vmatpush.msra.mxu2 %v111_v7 }
  0x34   :  { %474 = vmatpush.msrb.mxu1 %v1683_v62  ;;  %361 = vmatpush.msra.mxu3 %v1691_v0 }
  0x35   :  { %175 = vmatmul.f32.gmra.mxu0 %v93_v4  ;;  %251 = vmatpush.msra.mxu2 %v108_v9 }
  0x36   :  { %475 = vmatpush.msrb.mxu1 %v1691_v0  ;;  %362 = vmatpush.msra.mxu3 %v1702_v5 }
  0x37   :  { %216 = vmatmul.f32.gmra.mxu1 %v93_v4  ;;  %663 = vmatpush.msrb.mxu0 %v1587_v10 }
  0x38   :  { %476 = vmatpush.msrb.mxu1 %v1702_v5  ;;  %363 = vmatpush.msra.mxu3 %v1710_v8 }
  0x39   :  { %252 = vmatpush.msra.mxu2 %v105_v12  ;;  %664 = vmatpush.msrb.mxu0 %v1593_v13 }
  0x3a   :  { %477 = vmatpush.msrb.mxu1 %v1710_v8  ;;  %364 = vmatpush.msra.mxu3 %v1717_v11 }
  0x3b   :  { %253 = vmatpush.msra.mxu2 %v102_v15  ;;  %665 = vmatpush.msrb.mxu0 %v1599_v16 }
  0x3c   :  { %478 = vmatpush.msrb.mxu1 %v1717_v11  ;;  %365 = vmatpush.msra.mxu3 %v1724_v14 }
  0x3d   :  { %366 = vmatmul.f32.vlgmr.msra.gmra.mxu3 %v1510_v33  ;;  %254 = vmatmul.f32.vlgmr.msra.gmra.mxu2 %v92_v55 }
  0x3e   :  { %479 = vmatpush.msrb.mxu1 %v1724_v14  ;;  %432 = vmatpush.msrb.mxu3 %v1570_v1 }
  0x3f   :  { %566 = vmatpush.msrb.mxu2 %v1617_v23  ;;  %666 = vmatpush.msrb.mxu0 %v1605_v19 }
  0x40   :  { %546 = vmatpush.msra.mxu1 %v1570_v1  ;;  %433 = vmatpush.msrb.mxu3 %v1576_v3 }
  0x41   :  { %567 = vmatpush.msrb.mxu2 %v1623_v27  ;;  %667 = vmatpush.msrb.mxu0 %v1611_v22 }
  0x42   :  { %547 = vmatpush.msra.mxu1 %v1576_v3  ;;  %434 = vmatpush.msrb.mxu3 %v1581_v6 }
  0x43   :  { %568 = vmatpush.msrb.mxu2 %v1629_v31  ;;  %794 = vmatpush.msra.mxu0 %v1617_v23 }
  0x44   :  { %548 = vmatpush.msra.mxu1 %v1581_v6  ;;  %435 = vmatpush.msrb.mxu3 %v1587_v10 }
  0x45   :  { %569 = vmatpush.msrb.mxu2 %v1636_v36  ;;  %795 = vmatpush.msra.mxu0 %v1623_v27 }
  0x46   :  { %549 = vmatpush.msra.mxu1 %v1587_v10  ;;  %436 = vmatpush.msrb.mxu3 %v1593_v13 }
  0x47   :  { %257 = vmatmul.f32.gmra.mxu2 %v93_v4  ;;  %796 = vmatpush.msra.mxu0 %v1629_v31 }
  0x48   :  { %570 = vmatpush.msrb.mxu2 %v1642_v40  ;;  %550 = vmatpush.msra.mxu1 %v1593_v13 }
  0x49   :  { %437 = vmatpush.msrb.mxu3 %v1599_v16  ;;  %797 = vmatpush.msra.mxu0 %v1636_v36 }
  0x4a   :  { %571 = vmatpush.msrb.mxu2 %v1648_v44  ;;  %551 = vmatpush.msra.mxu1 %v1599_v16 }
  0x4b   :  { %438 = vmatpush.msrb.mxu3 %v1605_v19  ;;  %798 = vmatpush.msra.mxu0 %v1642_v40 }
  0x4c   :  { %572 = vmatpush.msrb.mxu2 %v1654_v47  ;;  %552 = vmatpush.msra.mxu1 %v1605_v19 }
  0x4d   :  { %439 = vmatpush.msrb.mxu3 %v1611_v22  ;;  %799 = vmatpush.msra.mxu0 %v1648_v44 }
  0x4e   :  { %573 = vmatpush.msrb.mxu2 %v1660_v52  ;;  %553 = vmatpush.msra.mxu1 %v1611_v22 }
  0x4f   :  { %452 = vmatpush.msra.mxu3 %v1617_v23  ;;  %800 = vmatpush.msra.mxu0 %v1654_v47 }
  0x50   :  { %700 = vmatpush.msra.mxu2 %v1671_v58  ;;  %219 = vmatmul.f32.gmra.mxu1 %v94_v17 }
  0x51   :  { %453 = vmatpush.msra.mxu3 %v1623_v27  ;;  %801 = vmatpush.msra.mxu0 %v1660_v52 }
  0x52   :  { %701 = vmatpush.msra.mxu2 %v1676_v60  ;;  %178 = vmatmul.f32.gmra.mxu0 %v94_v17 }
  0x53   :  { %454 = vmatpush.msra.mxu3 %v1629_v31  ;;  %260 = vmatmul.f32.gmra.mxu2 %v94_v17 }
  0x54   :  { %702 = vmatpush.msra.mxu2 %v1683_v62 }
  0x55   :  { %455 = vmatpush.msra.mxu3 %v1636_v36 }
  0x56   :  { %703 = vmatpush.msra.mxu2 %v1691_v0 }
  0x57   :  { %456 = vmatpush.msra.mxu3 %v1642_v40 }
  0x58   :  { %704 = vmatpush.msra.mxu2 %v1702_v5  ;;  %222 = vmatmul.f32.gmra.mxu1 %v95_v18 }
  0x59   :  { %457 = vmatpush.msra.mxu3 %v1648_v44 }
  0x5a   :  { %705 = vmatpush.msra.mxu2 %v1710_v8  ;;  %181 = vmatmul.f32.gmra.mxu0 %v95_v18 }
  0x5b   :  { %458 = vmatpush.msra.mxu3 %v1654_v47  ;;  %263 = vmatmul.f32.gmra.mxu2 %v95_v18 }
  0x5c   :  { %706 = vmatpush.msra.mxu2 %v1717_v11 }
  0x5d   :  { %459 = vmatpush.msra.mxu3 %v1660_v52 }
  0x5e   :  { %707 = vmatpush.msra.mxu2 %v1724_v14 }
  0x60   :  { %225 = vmatmul.f32.gmra.mxu1 %v96_v20 }
  0x62   :  { %184 = vmatmul.f32.gmra.mxu0 %v96_v20 }
  0x63   :  { %266 = vmatmul.f32.gmra.mxu2 %v96_v20 }
  0x68   :  { %228 = vmatmul.f32.gmra.mxu1 %v97_v21 }
  0x6a   :  { %187 = vmatmul.f32.gmra.mxu0 %v97_v21 }
  0x6b   :  { %269 = vmatmul.f32.gmra.mxu2 %v97_v21 }
  0x70   :  { %231 = vmatmul.f32.gmra.mxu1 %v98_v29 }
  0x72   :  { %190 = vmatmul.f32.gmra.mxu0 %v98_v29 }
  0x73   :  { %272 = vmatmul.f32.gmra.mxu2 %v98_v29 }
  0x78   :  { %234 = vmatmul.f32.gmra.mxu1 %v99_v41 }
  0x7a   :  { %193 = vmatmul.f32.gmra.mxu0 %v99_v41 }
  0x7b   :  { %275 = vmatmul.f32.gmra.mxu2 %v99_v41 }
  0xa2   :  { %v327_v25 = vpop.f32.mrf.mxu3 }
  0xaa   :  { %v173_v30 = vpop.f32.mrf.mxu0 }
  0xab   :  { %v174_v32 = vadd.f32 %v173_v30, %v1799_v26 }
  0xac   :  { %v214_v33 = vpop.f32.mrf.mxu1 }
  0xad   :  { %v215_v34 = vadd.f32 %v214_v33, %v1801_v28  ;;  %v370_v35 = vadd.f32 %v327_v25, %v174_v32 }
  0xaf   :  { %v1299_v37 = vmul.f32 -1.442695, %v370_v35 }
  0xb0   :  { %v347_v38 = vpop.f32.mrf.mxu3 }
  0xb1   :  { %v390_v39 = vadd.f32 %v347_v38, %v215_v34  ;;  %1347 = vpow2.f32 %v1299_v37 }
  0xb3   :  { %v1300_v42 = vmul.f32 -1.442695, %v390_v39 }
  0xb5   :  { %1349 = vpow2.f32 %v1300_v42  ;;  %v217_v42 = vpop.f32.mrf.mxu1 }
  0xb7   :  { %v1348_v43 = vpop.eup %1347 }
  0xb8   :  { %v374_v45 = vadd.f32 1.0, %v1348_v43 }
  0xba   :  { %1351 = vrcp.f32 %v374_v45  ;;  %v386_v57 = vand.u32 2147483648, %v374_v45  ;;  %v384_v61 = vand.u32 2147483647, %v374_v45  ;;  %vm380_vm1 = vweird.f32 %v374_v45 }
  0xbb   :  { %v1350_v46 = vpop.eup %1349 }
  0xbc   :  { %v394_v48 = vadd.f32 1.0, %v1350_v46  ;;  %v387_v15 = vor.u32 1.1754944e-38, %v386_v57  ;;  %vm385_vm3 = vcmp.eq.f32.partialorder %v384_v61, 8.507059e+37  ;;  %v218_v57 = vadd.f32 %v217_v42, %v1801_v28 }
  0xbe   :  { %1353 = vrcp.f32 %v394_v48  ;;  %vm400_vm4 = vweird.f32 %v394_v48  ;;  %v406_v25 = vand.u32 2147483648, %v394_v48  ;;  %v404_v29 = vand.u32 2147483647, %v394_v48 }
  0xc0   :  { %v1352_v49 = vpop.eup %1351  ;;  %v367_v56 = vpop.f32.mrf.mxu3  ;;  %v407_v33 = vor.u32 1.1754944e-38, %v406_v25  ;;  %vm405_vm7 = vcmp.eq.f32.partialorder %v404_v29, 8.507059e+37 }
  0xc1   :  { %v376_v50 = vmul.f32 %v1352_v49, %v374_v45  ;;  %vm381_vm0 = vweird.f32 %v1352_v49  ;;  %v255_v4 = vpop.f32.mrf.mxu2  ;;  %v410_v9 = vadd.f32 %v1814_v53, %v367_v56 }
  0xc2   :  { %vm382_vm2 = vmor %vm380_vm1, %vm381_vm0  ;;  %v256_v18 = vadd.f32 %v255_v4, %v1816_v63 }
  0xc3   :  { %v377_v54 = vsub.f32 1.0, %v376_v50 }
  0xc4   :  { %v1354_v51 = vpop.eup %1353 }
  0xc5   :  { %v396_v55 = vmul.f32 %v1354_v51, %v394_v48  ;;  %v378_v59 = vmul.f32 %v1352_v49, %v377_v54  ;;  %vm401_vm5 = vweird.f32 %v1354_v51  ;;  %v176_v48 = vpop.f32.mrf.mxu0 }
  0xc6   :  { %vm402_vm6 = vmor %vm400_vm4, %vm401_vm5  ;;  %v177_v50 = vadd.f32 %v176_v48, %v1799_v26 }
  0xc7   :  { %v397_v2 = vsub.f32 1.0, %v396_v55  ;;  %v379_v7 = vadd.f32 %v1352_v49, %v378_v59 }
  0xc9   :  { %v398_v12 = vmul.f32 %v1354_v51, %v397_v2  ;;  %v383_v17 = vsel %vm382_vm2, %v1352_v49, %v379_v7 }
  0xca   :  { %v388_v20 = vsel %vm385_vm3, %v387_v15, %v383_v17 }
  0xcb   :  { %v399_v21 = vadd.f32 %v1354_v51, %v398_v12  ;;  %v411_v24 = vmul.f32 %v410_v9, %v388_v20 }
  0xcd   :  { %v412_v30 = vadd.f32 %v411_v24, %v256_v18  ;;  %v403_v32 = vsel %vm402_vm6, %v1354_v51, %v399_v21  ;;  %v1852_v43 = vpop.f32.mrf.mxu1 }
  0xce   :  { %v408_v34 = vsel %vm405_vm7, %v407_v33, %v403_v32 }
  0xcf   :  { %1355 = vtanh.f32 %v412_v30  ;;  %v414_v35 = vsub.f32 1.0, %v408_v34  ;;  %v416_v39 = vmul.f32 0.0, %v408_v34  ;;  %v258_v30 = vpop.f32.mrf.mxu2 }
  0xd5   :  { %v1356_v37 = vpop.eup %1355  ;;  %v1854_v45 = vpop.f32.mrf.mxu1 }
  0xd6   :  { %v415_v38 = vmul.f32 %v1356_v37, %v414_v35 }
  0xd8   :  { %v1820_v41 = vadd.f32 %v416_v39, %v415_v38  ;;  %v259_v38 = vadd.f32 %v258_v30, %v1816_v63 }
  0xda   :  { %1301 = vmatmul.msk.f32.vlgmr.msrb.gmra.mxu3 %vm306_vm8, %v1820_v41  ;;  %1303 = vmatmul.msk.f32.vlgmr.msrb.gmra.mxu1 %vm306_vm8, %v1820_v41 }
  0xdb   :  { %586 = vmatpush.msrb.mxu3 %v1671_v58  ;;  %680 = vmatpush.msrb.mxu1 %v1617_v23 }
  0xdd   :  { %587 = vmatpush.msrb.mxu3 %v1676_v60  ;;  %681 = vmatpush.msrb.mxu1 %v1623_v27  ;;  %v1856_v46 = vpop.f32.mrf.mxu1 }
  0xdf   :  { %588 = vmatpush.msrb.mxu3 %v1683_v62  ;;  %682 = vmatpush.msrb.mxu1 %v1629_v31 }
  0xe1   :  { %589 = vmatpush.msrb.mxu3 %v1691_v0  ;;  %683 = vmatpush.msrb.mxu1 %v1636_v36 }
  0xe2   :  { %1302 = vmatmul.msk.f32.vlgmr.msra.gmra.mxu3 %vm306_vm8, %v1820_v41 }
  0xe3   :  { %590 = vmatpush.msrb.mxu3 %v1702_v5  ;;  %684 = vmatpush.msrb.mxu1 %v1642_v40 }
  0xe5   :  { %591 = vmatpush.msrb.mxu3 %v1710_v8  ;;  %685 = vmatpush.msrb.mxu1 %v1648_v44  ;;  %v1858_v49 = vpop.f32.mrf.mxu1 }
  0xe7   :  { %592 = vmatpush.msrb.mxu3 %v1717_v11  ;;  %686 = vmatpush.msrb.mxu1 %v1654_v47 }
  0xe9   :  { %593 = vmatpush.msrb.mxu3 %v1724_v14  ;;  %687 = vmatpush.msrb.mxu1 %v1660_v52 }
  0xeb   :  { %774 = vmatpush.msra.mxu3 %v1570_v1 }
  0xed   :  { %775 = vmatpush.msra.mxu3 %v1576_v3  ;;  %v1861_v56 = vpop.f32.mrf.mxu1 }
  0xef   :  { %776 = vmatpush.msra.mxu3 %v1581_v6 }
  0xf1   :  { %777 = vmatpush.msra.mxu3 %v1587_v10 }
  0xf3   :  { %778 = vmatpush.msra.mxu3 %v1593_v13 }
  0xf5   :  { %779 = vmatpush.msra.mxu3 %v1599_v16  ;;  %v1864_v9 = vpop.f32.mrf.mxu1 }
  0xf7   :  { %780 = vmatpush.msra.mxu3 %v1605_v19 }
  0xf9   :  { %781 = vmatpush.msra.mxu3 %v1611_v22 }
 0x157   :  { %v481_v25 = vpop.f32.mrf.mxu1 }
 0x158   :  { %v524_v34 = vadd.f32 %v1814_v53, %v481_v25 }
 0x15d   :  { %v441_v51 = vpop.f32.mrf.mxu3 }
 0x15e   :  { %v484_v54 = vadd.f32 %v441_v51, %v177_v50 }
 0x160   :  { %v1304_v55 = vmul.f32 -1.442695, %v484_v54 }
 0x162   :  { %1357 = vpow2.f32 %v1304_v55 }
 0x165   :  { %v461_v59 = vpop.f32.mrf.mxu3 }
 0x166   :  { %v504_v61 = vadd.f32 %v461_v59, %v218_v57 }
 0x168   :  { %v1358_v2 = vpop.eup %1357  ;;  %v1305_v4 = vmul.f32 -1.442695, %v504_v61 }
 0x169   :  { %v488_v7 = vadd.f32 1.0, %v1358_v2 }
 0x16a   :  { %1359 = vpow2.f32 %v1305_v4 }
 0x16b   :  { %1361 = vrcp.f32 %v488_v7  ;;  %v500_v21 = vand.u32 2147483648, %v488_v7  ;;  %v498_v29 = vand.u32 2147483647, %v488_v7  ;;  %vm494_vm10 = vweird.f32 %v488_v7 }
 0x16d   :  { %v501_v35 = vor.u32 1.1754944e-38, %v500_v21  ;;  %vm499_vm12 = vcmp.eq.f32.partialorder %v498_v29, 8.507059e+37  ;;  %v179_v29 = vpop.f32.mrf.mxu0 }
 0x170   :  { %v1360_v12 = vpop.eup %1359 }
 0x171   :  { %v1362_v15 = vpop.eup %1361  ;;  %v508_v17 = vadd.f32 1.0, %v1360_v12 }
 0x172   :  { %v490_v18 = vmul.f32 %v1362_v15, %v488_v7  ;;  %vm495_vm9 = vweird.f32 %v1362_v15 }
 0x173   :  { %1363 = vrcp.f32 %v508_v17  ;;  %vm496_vm11 = vmor %vm494_vm10, %vm495_vm9  ;;  %v520_v51 = vand.u32 2147483648, %v508_v17  ;;  %v518_v55 = vand.u32 2147483647, %v508_v17  ;;  %vm514_vm14 = vweird.f32 %v508_v17 }
 0x174   :  { %v491_v20 = vsub.f32 1.0, %v490_v18 }
 0x175   :  { %v521_v61 = vor.u32 1.1754944e-38, %v520_v51  ;;  %vm519_vm0 = vcmp.eq.f32.partialorder %v518_v55, 8.507059e+37 }
 0x176   :  { %v492_v24 = vmul.f32 %v1362_v15, %v491_v20 }
 0x178   :  { %v493_v32 = vadd.f32 %v1362_v15, %v492_v24 }
 0x179   :  { %v1364_v33 = vpop.eup %1363 }
 0x17a   :  { %v510_v37 = vmul.f32 %v1364_v33, %v508_v17  ;;  %v497_v39 = vsel %vm496_vm11, %v1362_v15, %v493_v32  ;;  %vm515_vm13 = vweird.f32 %v1364_v33  ;;  %v180_v32 = vadd.f32 %v179_v29, %v1799_v26 }
 0x17b   :  { %v502_v42 = vsel %vm499_vm12, %v501_v35, %v497_v39  ;;  %vm516_vm15 = vmor %vm514_vm14, %vm515_vm13 }
 0x17c   :  { %v511_v48 = vsub.f32 1.0, %v510_v37  ;;  %v525_v50 = vmul.f32 %v524_v34, %v502_v42  ;;  %v221_v37 = vadd.f32 %v1852_v43, %v1801_v28 }
 0x17e   :  { %v512_v54 = vmul.f32 %v1364_v33, %v511_v48  ;;  %v526_v57 = vadd.f32 %v525_v50, %v259_v38 }
 0x180   :  { %v513_v59 = vadd.f32 %v1364_v33, %v512_v54  ;;  %1365 = vtanh.f32 %v526_v57 }
 0x182   :  { %v517_v2 = vsel %vm516_vm15, %v1364_v33, %v513_v59 }
 0x183   :  { %v522_v4 = vsel %vm519_vm0, %v521_v61, %v517_v2 }
 0x184   :  { %v528_v7 = vsub.f32 1.0, %v522_v4  ;;  %v530_v18 = vmul.f32 %v522_v4, %v1820_v41  ;;  %v261_v41 = vpop.f32.mrf.mxu2 }
 0x186   :  { %v1366_v12 = vpop.eup %1365 }
 0x187   :  { %v529_v15 = vmul.f32 %v1366_v12, %v528_v7 }
 0x189   :  { %v1869_v20 = vadd.f32 %v530_v18, %v529_v15 }
 0x18b   :  { %1306 = vmatmul.msk.f32.vlgmr.msra.gmra.mxu1 %vm306_vm8, %v1869_v20  ;;  %1307 = vmatmul.msk.f32.vlgmr.msrb.gmra.mxu2 %vm306_vm8, %v1869_v20 }
 0x18c   :  { %1308 = vmatmul.msk.f32.vlgmr.msrb.gmra.mxu3 %vm306_vm8, %v1869_v20  ;;  %814 = vmatpush.msra.mxu1 %v1671_v58  ;;  %v1901_v17 = vpop.f32.mrf.mxu2 }
 0x18d   :  { %888 = vmatpush.msrb.mxu2 %v1570_v1  ;;  %908 = vmatpush.msrb.mxu3 %v1617_v23 }
 0x18e   :  { %815 = vmatpush.msra.mxu1 %v1676_v60 }
 0x18f   :  { %889 = vmatpush.msrb.mxu2 %v1576_v3  ;;  %909 = vmatpush.msrb.mxu3 %v1623_v27 }
 0x190   :  { %816 = vmatpush.msra.mxu1 %v1683_v62 }
 0x191   :  { %890 = vmatpush.msrb.mxu2 %v1581_v6  ;;  %910 = vmatpush.msrb.mxu3 %v1629_v31 }
 0x192   :  { %817 = vmatpush.msra.mxu1 %v1691_v0 }
 0x193   :  { %891 = vmatpush.msrb.mxu2 %v1587_v10  ;;  %911 = vmatpush.msrb.mxu3 %v1636_v36 }
 0x194   :  { %818 = vmatpush.msra.mxu1 %v1702_v5  ;;  %v1903_v21 = vpop.f32.mrf.mxu2 }
 0x195   :  { %892 = vmatpush.msrb.mxu2 %v1593_v13  ;;  %912 = vmatpush.msrb.mxu3 %v1642_v40 }
 0x196   :  { %819 = vmatpush.msra.mxu1 %v1710_v8 }
 0x197   :  { %893 = vmatpush.msrb.mxu2 %v1599_v16  ;;  %913 = vmatpush.msrb.mxu3 %v1648_v44 }
 0x198   :  { %820 = vmatpush.msra.mxu1 %v1717_v11 }
 0x199   :  { %894 = vmatpush.msrb.mxu2 %v1605_v19  ;;  %914 = vmatpush.msrb.mxu3 %v1654_v47 }
 0x19a   :  { %821 = vmatpush.msra.mxu1 %v1724_v14 }
 0x19b   :  { %895 = vmatpush.msrb.mxu2 %v1611_v22  ;;  %915 = vmatpush.msrb.mxu3 %v1660_v52 }
 0x19c   :  { %v1905_v25 = vpop.f32.mrf.mxu2 }
 0x1a4   :  { %v1907_v24 = vpop.f32.mrf.mxu2 }
 0x1ac   :  { %v1909_v30 = vpop.f32.mrf.mxu2 }
 0x208   :  { %v555_v33 = vpop.f32.mrf.mxu1 }
 0x209   :  { %v598_v34 = vadd.f32 %v555_v33, %v180_v32 }
 0x20b   :  { %v1309_v35 = vmul.f32 -1.442695, %v598_v34  ;;  %v262_v34 = vadd.f32 %v261_v41, %v1816_v63 }
 0x20d   :  { %1367 = vpow2.f32 %v1309_v35 }
 0x20e   :  { %v575_v38 = vpop.f32.mrf.mxu2 }
 0x20f   :  { %v618_v39 = vadd.f32 %v575_v38, %v221_v37  ;;  %v595_v43 = vpop.f32.mrf.mxu3 }
 0x210   :  { %v638_v33 = vadd.f32 %v1814_v53, %v595_v43 }
 0x211   :  { %v1310_v42 = vmul.f32 -1.442695, %v618_v39 }
 0x213   :  { %v1368_v48 = vpop.eup %1367  ;;  %1369 = vpow2.f32 %v1310_v42 }
 0x214   :  { %v602_v50 = vadd.f32 1.0, %v1368_v48 }
 0x216   :  { %1371 = vrcp.f32 %v602_v50  ;;  %v614_v61 = vand.u32 2147483648, %v602_v50  ;;  %v612_v4 = vand.u32 2147483647, %v602_v50  ;;  %vm608_vm2 = vweird.f32 %v602_v50 }
 0x218   :  { %v615_v18 = vor.u32 1.1754944e-38, %v614_v61  ;;  %vm613_vm4 = vcmp.eq.f32.partialorder %v612_v4, 8.507059e+37 }
 0x219   :  { %v1370_v51 = vpop.eup %1369 }
 0x21a   :  { %v622_v54 = vadd.f32 1.0, %v1370_v51 }
 0x21c   :  { %v1372_v55 = vpop.eup %1371  ;;  %1373 = vrcp.f32 %v622_v54  ;;  %v634_v39 = vand.u32 2147483648, %v622_v54  ;;  %v632_v42 = vand.u32 2147483647, %v622_v54  ;;  %vm628_vm6 = vweird.f32 %v622_v54 }
 0x21d   :  { %v604_v57 = vmul.f32 %v1372_v55, %v602_v50  ;;  %vm609_vm1 = vweird.f32 %v1372_v55 }
 0x21e   :  { %vm610_vm3 = vmor %vm608_vm2, %vm609_vm1  ;;  %vm633_vm9 = vcmp.eq.f32.partialorder %v632_v42, 8.507059e+37 }
 0x21f   :  { %v605_v59 = vsub.f32 1.0, %v604_v57  ;;  %v635_v57 = vor.u32 1.1754944e-38, %v634_v39 }
 0x221   :  { %v606_v2 = vmul.f32 %v1372_v55, %v605_v59 }
 0x222   :  { %v1374_v7 = vpop.eup %1373 }
 0x223   :  { %v624_v12 = vmul.f32 %v1374_v7, %v622_v54  ;;  %v607_v15 = vadd.f32 %v1372_v55, %v606_v2  ;;  %vm629_vm5 = vweird.f32 %v1374_v7 }
 0x224   :  { %vm630_vm7 = vmor %vm628_vm6, %vm629_vm5 }
 0x225   :  { %v625_v29 = vsub.f32 1.0, %v624_v12  ;;  %v611_v32 = vsel %vm610_vm3, %v1372_v55, %v607_v15 }
 0x226   :  { %v616_v35 = vsel %vm613_vm4, %v615_v18, %v611_v32 }
 0x227   :  { %v626_v37 = vmul.f32 %v1374_v7, %v625_v29  ;;  %v639_v38 = vmul.f32 %v638_v33, %v616_v35 }
 0x229   :  { %v640_v48 = vadd.f32 %v639_v38, %v262_v34  ;;  %v627_v51 = vadd.f32 %v1374_v7, %v626_v37 }
 0x22b   :  { %1375 = vtanh.f32 %v640_v48  ;;  %v631_v50 = vsel %vm630_vm7, %v1374_v7, %v627_v51 }
 0x22c   :  { %v636_v55 = vsel %vm633_vm9, %v635_v57, %v631_v50  ;;  %v265_v50 = vadd.f32 %v1901_v17, %v1816_v63  ;;  %v1429_v17 = vld [vmem:[%s2137_s3 + $0xa8] sm:$0xff] }
 0x22d   :  { %v642_v59 = vsub.f32 1.0, %v636_v55  ;;  %v644_v41 = vmul.f32 %v636_v55, %v1869_v20 }
 0x231   :  { %v1376_v61 = vpop.eup %1375 }
 0x232   :  { %v643_v2 = vmul.f32 %v1376_v61, %v642_v59 }
 0x234   :  { %v1917_v4 = vadd.f32 %v644_v41, %v643_v2 }
 0x236   :  { %1311 = vmatmul.msk.f32.vlgmr.msrb.gmra.mxu0 %vm306_vm8, %v1917_v4  ;;  %1312 = vmatmul.msk.f32.vlgmr.msrb.gmra.mxu1 %vm306_vm8, %v1917_v4 }
 0x237   :  { %1313 = vmatmul.msk.f32.vlgmr.msra.gmra.mxu2 %vm306_vm8, %v1917_v4  ;;  %928 = vmatpush.msrb.mxu0 %v1671_v58 }
 0x238   :  { %1002 = vmatpush.msrb.mxu1 %v1570_v1  ;;  %1022 = vmatpush.msra.mxu2 %v1617_v23  ;;  %v182_v1 = vpop.f32.mrf.mxu0 }
 0x239   :  { %929 = vmatpush.msrb.mxu0 %v1676_v60 }
 0x23a   :  { %1003 = vmatpush.msrb.mxu1 %v1576_v3  ;;  %1023 = vmatpush.msra.mxu2 %v1623_v27 }
 0x23b   :  { %930 = vmatpush.msrb.mxu0 %v1683_v62 }
 0x23c   :  { %1004 = vmatpush.msrb.mxu1 %v1581_v6  ;;  %1024 = vmatpush.msra.mxu2 %v1629_v31 }
 0x23d   :  { %931 = vmatpush.msrb.mxu0 %v1691_v0 }
 0x23e   :  { %1005 = vmatpush.msrb.mxu1 %v1587_v10  ;;  %1025 = vmatpush.msra.mxu2 %v1636_v36 }
 0x23f   :  { %932 = vmatpush.msrb.mxu0 %v1702_v5 }
 0x240   :  { %1006 = vmatpush.msrb.mxu1 %v1593_v13  ;;  %1026 = vmatpush.msra.mxu2 %v1642_v40  ;;  %v1949_v3 = vpop.f32.mrf.mxu0 }
 0x241   :  { %933 = vmatpush.msrb.mxu0 %v1710_v8 }
 0x242   :  { %1007 = vmatpush.msrb.mxu1 %v1599_v16  ;;  %1027 = vmatpush.msra.mxu2 %v1648_v44  ;;  %v224_v16 = vadd.f32 %v1854_v45, %v1801_v28 }
 0x243   :  { %934 = vmatpush.msrb.mxu0 %v1717_v11 }
 0x244   :  { %1008 = vmatpush.msrb.mxu1 %v1605_v19  ;;  %1028 = vmatpush.msra.mxu2 %v1654_v47  ;;  %v183_v19 = vadd.f32 %v182_v1, %v1799_v26 }
 0x245   :  { %935 = vmatpush.msrb.mxu0 %v1724_v14 }
 0x246   :  { %1009 = vmatpush.msrb.mxu1 %v1611_v22  ;;  %1029 = vmatpush.msra.mxu2 %v1660_v52 }
 0x248   :  { %v1951_v6 = vpop.f32.mrf.mxu0 }
 0x250   :  { %v1953_v10 = vpop.f32.mrf.mxu0 }
 0x258   :  { %v1955_v13 = vpop.f32.mrf.mxu0 }
 0x2b3   :  { %v669_v23 = vpop.f32.mrf.mxu0  ;;  %v689_v27 = vpop.f32.mrf.mxu1 }
 0x2b4   :  { %v712_v31 = vadd.f32 %v669_v23, %v183_v19  ;;  %v732_v22 = vadd.f32 %v689_v27, %v224_v16 }
 0x2b6   :  { %v1314_v36 = vmul.f32 -1.442695, %v712_v31  ;;  %v1315_v40 = vmul.f32 -1.442695, %v732_v22  ;;  %v1431_v22 = vld [vmem:[%s2137_s3 + $0x90] sm:$0xff] }
 0x2b8   :  { %1377 = vpow2.f32 %v1314_v36  ;;  %v1433_v36 = vld [vmem:[%s2137_s3 + $0x78] sm:$0xff] }
 0x2b9   :  { %1379 = vpow2.f32 %v1315_v40  ;;  %v1435_v40 = vld [vmem:[%s2137_s3 + $0x60] sm:$0xff] }
 0x2ba   :  { %v709_v35 = vpop.f32.mrf.mxu2 }
 0x2bb   :  { %v752_v42 = vadd.f32 %v1814_v53, %v709_v35 }
 0x2be   :  { %v1378_v44 = vpop.eup %1377 }
 0x2bf   :  { %v1380_v47 = vpop.eup %1379  ;;  %v716_v20 = vadd.f32 1.0, %v1378_v44  ;;  %v1437_v44 = vld [vmem:[%s2137_s3 + $0x48] sm:$0xff] }
 0x2c0   :  { %v736_v54 = vadd.f32 1.0, %v1380_v47  ;;  %v1439_v47 = vld [vmem:[%s2137_s3 + $0x30] sm:$0xff] }
 0x2c1   :  { %1381 = vrcp.f32 %v716_v20  ;;  %v728_v29 = vand.u32 2147483648, %v716_v20  ;;  %v726_v33 = vand.u32 2147483647, %v716_v20  ;;  %vm722_vm11 = vweird.f32 %v716_v20 }
 0x2c2   :  { %1383 = vrcp.f32 %v736_v54  ;;  %v748_v57 = vand.u32 2147483648, %v736_v54  ;;  %vm742_vm15 = vweird.f32 %v736_v54  ;;  %v746_v59 = vand.u32 2147483647, %v736_v54 }
 0x2c3   :  { %v729_v38 = vor.u32 1.1754944e-38, %v728_v29  ;;  %vm727_vm13 = vcmp.eq.f32.partialorder %v726_v33, 8.507059e+37 }
 0x2c4   :  { %v749_v41 = vor.u32 1.1754944e-38, %v748_v57  ;;  %vm747_vm1 = vcmp.eq.f32.partialorder %v746_v59, 8.507059e+37 }
 0x2c7   :  { %v1382_v7 = vpop.eup %1381 }
 0x2c8   :  { %v1384_v43 = vpop.eup %1383  ;;  %v718_v12 = vmul.f32 %v1382_v7, %v716_v20  ;;  %vm723_vm10 = vweird.f32 %v1382_v7  ;;  %v1441_v20 = vld [vmem:[%s2137_s3 + $0x18] sm:$0xff] }
 0x2c9   :  { %v738_v45 = vmul.f32 %v1384_v43, %v736_v54  ;;  %vm724_vm12 = vmor %vm722_vm11, %vm723_vm10  ;;  %vm743_vm14 = vweird.f32 %v1384_v43  ;;  %v1443_v54 = vld [vmem:[%s2137_s3] sm:$0xff] }
 0x2ca   :  { %v719_v15 = vsub.f32 1.0, %v718_v12  ;;  %vm744_vm0 = vmor %vm742_vm15, %vm743_vm14 }
 0x2cb   :  { %v739_v18 = vsub.f32 1.0, %v738_v45  ;;  %v186_v45 = vadd.f32 %v1949_v3, %v1799_v26 }
 0x2cc   :  { %v720_v32 = vmul.f32 %v1382_v7, %v719_v15 }
 0x2cd   :  { %v740_v34 = vmul.f32 %v1384_v43, %v739_v18 }
 0x2ce   :  { %v721_v37 = vadd.f32 %v1382_v7, %v720_v32 }
 0x2cf   :  { %v741_v48 = vadd.f32 %v1384_v43, %v740_v34 }
 0x2d0   :  { %v725_v39 = vsel %vm724_vm12, %v1382_v7, %v721_v37 }
 0x2d1   :  { %v730_v51 = vsel %vm727_vm13, %v729_v38, %v725_v39  ;;  %v745_v2 = vsel %vm744_vm0, %v1384_v43, %v741_v48 }
 0x2d2   :  { %v753_v55 = vmul.f32 %v752_v42, %v730_v51  ;;  %v750_v1 = vsel %vm747_vm1, %v749_v41, %v745_v2 }
 0x2d3   :  { %v756_v16 = vsub.f32 1.0, %v750_v1  ;;  %v758_v27 = vmul.f32 %v750_v1, %v1917_v4  ;;  %v1430_v4 = vld [vmem:[%s2137_s3 + $0xb0] sm:$0xff] }
 0x2d4   :  { %v754_v61 = vadd.f32 %v753_v55, %v265_v50 }
 0x2d6   :  { %1385 = vtanh.f32 %v754_v61 }
 0x2dc   :  { %v1386_v19 = vpop.eup %1385 }
 0x2dd   :  { %v757_v23 = vmul.f32 %v1386_v19, %v756_v16  ;;  %v268_v16 = vadd.f32 %v1903_v21, %v1816_v63  ;;  %v1444_v21 = vld [vmem:[%s2137_s3 + $0xb8] sm:$0xff] }
 0x2df   :  { %v1964_v31 = vadd.f32 %v758_v27, %v757_v23 }
 0x2e1   :  { %1316 = vmatmul.msk.f32.vlgmr.msra.gmra.mxu3 %vm306_vm8, %v1964_v31  ;;  %1317 = vmatmul.msk.f32.vlgmr.msra.gmra.mxu0 %vm306_vm8, %v1964_v31 }
 0x2e2   :  { %1318 = vmatmul.msk.f32.vlgmr.msra.gmra.mxu1 %vm306_vm8, %v1964_v31  ;;  %1042 = vmatpush.msra.mxu3 %v1671_v58  ;;  %v1432_v58 = vld [vmem:[%s2137_s3 + $0x98] sm:$0xff] }
 0x2e3   :  { %1116 = vmatpush.msra.mxu0 %v1429_v17  ;;  %1136 = vmatpush.msra.mxu1 %v1430_v4 }
 0x2e4   :  { %1043 = vmatpush.msra.mxu3 %v1676_v60  ;;  %v1434_v60 = vld [vmem:[%s2137_s3 + $0x80] sm:$0xff] }
 0x2e5   :  { %1117 = vmatpush.msra.mxu0 %v1431_v22  ;;  %1137 = vmatpush.msra.mxu1 %v1432_v58 }
 0x2e6   :  { %1044 = vmatpush.msra.mxu3 %v1683_v62  ;;  %v1436_v62 = vld [vmem:[%s2137_s3 + $0x68] sm:$0xff] }
 0x2e7   :  { %1118 = vmatpush.msra.mxu0 %v1433_v36  ;;  %1138 = vmatpush.msra.mxu1 %v1434_v60 }
 0x2e8   :  { %1045 = vmatpush.msra.mxu3 %v1691_v0  ;;  %v1438_v0 = vld [vmem:[%s2137_s3 + $0x50] sm:$0xff] }
 0x2e9   :  { %1119 = vmatpush.msra.mxu0 %v1435_v40  ;;  %1139 = vmatpush.msra.mxu1 %v1436_v62 }
 0x2ea   :  { %1046 = vmatpush.msra.mxu3 %v1702_v5  ;;  %v1440_v5 = vld [vmem:[%s2137_s3 + $0x38] sm:$0xff] }
 0x2eb   :  { %1120 = vmatpush.msra.mxu0 %v1437_v44  ;;  %1140 = vmatpush.msra.mxu1 %v1438_v0  ;;  %v1446_v0 = vld [vmem:[%s2137_s3 + $0x88] sm:$0xff] }
 0x2ec   :  { %1047 = vmatpush.msra.mxu3 %v1710_v8  ;;  %v1442_v8 = vld [vmem:[%s2137_s3 + $0x20] sm:$0xff] }
 0x2ed   :  { %1121 = vmatpush.msra.mxu0 %v1439_v47  ;;  %1141 = vmatpush.msra.mxu1 %v1440_v5  ;;  %v1447_v47 = vld [vmem:[%s2137_s3 + $0x70] sm:$0xff]  ;;  %v1448_v5 = vld [vmem:[%s2137_s3 + $0x58] sm:$0xff] }
 0x2ee   :  { %1048 = vmatpush.msra.mxu3 %v1717_v11  ;;  %v227_v11 = vadd.f32 %v1856_v46, %v1801_v28 }
 0x2ef   :  { %1122 = vmatpush.msra.mxu0 %v1441_v20  ;;  %1142 = vmatpush.msra.mxu1 %v1442_v8  ;;  %v1449_v20 = vld [vmem:[%s2137_s3 + $0x40] sm:$0xff]  ;;  %v1450_v8 = vld [vmem:[%s2137_s3 + $0x28] sm:$0xff] }
 0x2f0   :  { %1049 = vmatpush.msra.mxu3 %v1724_v14 }
 0x2f1   :  { %1123 = vmatpush.msra.mxu0 %v1443_v54  ;;  %1143 = vmatpush.msra.mxu1 %v1660_v52  ;;  %v230_v54 = vadd.f32 %v1858_v49, %v1801_v28 }
 0x35e   :  { %v803_v7 = vpop.f32.mrf.mxu0 }
 0x35f   :  { %v846_v43 = vadd.f32 %v803_v7, %v227_v11  ;;  %v823_v57 = vpop.f32.mrf.mxu1  ;;  %v189_v11 = vadd.f32 %v1951_v6, %v1799_v26 }
 0x360   :  { %v866_v61 = vadd.f32 %v1814_v53, %v823_v57 }
 0x361   :  { %v1320_v12 = vmul.f32 -1.442695, %v846_v43 }
 0x363   :  { %1387 = vpow2.f32 %v1320_v12 }
 0x364   :  { %v783_v15 = vpop.f32.mrf.mxu3 }
 0x365   :  { %v826_v18 = vadd.f32 %v783_v15, %v186_v45 }
 0x367   :  { %v1319_v29 = vmul.f32 -1.442695, %v826_v18 }
 0x369   :  { %v1388_v32 = vpop.eup %1387  ;;  %1389 = vpow2.f32 %v1319_v29 }
 0x36a   :  { %v850_v33 = vadd.f32 1.0, %v1388_v32 }
 0x36c   :  { %1391 = vrcp.f32 %v850_v33  ;;  %v862_v19 = vand.u32 2147483648, %v850_v33  ;;  %vm856_vm7 = vweird.f32 %v850_v33  ;;  %v860_v27 = vand.u32 2147483647, %v850_v33 }
 0x36e   :  { %v863_v22 = vor.u32 1.1754944e-38, %v862_v19  ;;  %vm861_vm10 = vcmp.eq.f32.partialorder %v860_v27, 8.507059e+37 }
 0x36f   :  { %v1390_v34 = vpop.eup %1389 }
 0x370   :  { %v830_v35 = vadd.f32 1.0, %v1390_v34 }
 0x372   :  { %1393 = vrcp.f32 %v830_v35  ;;  %v1392_v52 = vpop.eup %1391  ;;  %v842_v48 = vand.u32 2147483648, %v830_v35  ;;  %v840_v3 = vand.u32 2147483647, %v830_v35  ;;  %vm836_vm3 = vweird.f32 %v830_v35 }
 0x373   :  { %v852_v37 = vmul.f32 %v1392_v52, %v850_v33  ;;  %vm857_vm6 = vweird.f32 %v1392_v52 }
 0x374   :  { %v843_v59 = vor.u32 1.1754944e-38, %v842_v48  ;;  %vm841_vm5 = vcmp.eq.f32.partialorder %v840_v3, 8.507059e+37  ;;  %vm858_vm9 = vmor %vm856_vm7, %vm857_vm6 }
 0x375   :  { %v853_v39 = vsub.f32 1.0, %v852_v37 }
 0x377   :  { %v854_v50 = vmul.f32 %v1392_v52, %v853_v39 }
 0x378   :  { %v1394_v46 = vpop.eup %1393 }
 0x379   :  { %v832_v38 = vmul.f32 %v1394_v46, %v830_v35  ;;  %vm837_vm2 = vweird.f32 %v1394_v46  ;;  %v855_v41 = vadd.f32 %v1392_v52, %v854_v50 }
 0x37a   :  { %vm838_vm4 = vmor %vm836_vm3, %vm837_vm2 }
 0x37b   :  { %v833_v42 = vsub.f32 1.0, %v832_v38  ;;  %v859_v4 = vsel %vm858_vm9, %v1392_v52, %v855_v41 }
 0x37c   :  { %v864_v58 = vsel %vm861_vm10, %v863_v22, %v859_v4 }
 0x37d   :  { %v834_v51 = vmul.f32 %v1394_v46, %v833_v42  ;;  %v870_v36 = vsub.f32 1.0, %v864_v58  ;;  %v872_v62 = vmul.f32 %v864_v58, %v1964_v31  ;;  %v1445_v31 = vld [vmem:[%s2137_s3 + $0xa0] sm:$0xff] }
 0x37f   :  { %v835_v55 = vadd.f32 %v1394_v46, %v834_v51 }
 0x381   :  { %v839_v2 = vsel %vm838_vm4, %v1394_v46, %v835_v55 }
 0x382   :  { %v844_v1 = vsel %vm841_vm5, %v843_v59, %v839_v2 }
 0x383   :  { %v867_v23 = vmul.f32 %v866_v61, %v844_v1  ;;  %v271_v61 = vadd.f32 %v1905_v25, %v1816_v63  ;;  %v192_v25 = vadd.f32 %v1953_v10, %v1799_v26 }
 0x385   :  { %v868_v17 = vadd.f32 %v867_v23, %v268_v16 }
 0x387   :  { %1395 = vtanh.f32 %v868_v17 }
 0x38d   :  { %v1396_v60 = vpop.eup %1395 }
 0x38e   :  { %v871_v40 = vmul.f32 %v1396_v60, %v870_v36 }
 0x390   :  { %v2034_v44 = vadd.f32 %v872_v62, %v871_v40 }
 0x392   :  { %1321 = vmatmul.msk.f32.vlgmr.msrb.gmra.mxu2 %vm306_vm8, %v2034_v44  ;;  %1322 = vmatmul.msk.f32.vlgmr.msrb.gmra.mxu3 %vm306_vm8, %v2034_v44 }
 0x393   :  { %1323 = vmatmul.msk.f32.vlgmr.msrb.gmra.mxu0 %vm306_vm8, %v2034_v44  ;;  %1156 = vmatpush.msrb.mxu2 %v1444_v21  ;;  %v233_v21 = vadd.f32 %v1861_v56, %v1801_v28 }
 0x395   :  { %1157 = vmatpush.msrb.mxu2 %v1445_v31 }
 0x397   :  { %1158 = vmatpush.msrb.mxu2 %v1446_v0 }
 0x399   :  { %1159 = vmatpush.msrb.mxu2 %v1447_v47 }
 0x39b   :  { %1160 = vmatpush.msrb.mxu2 %v1448_v5 }
 0x39d   :  { %1161 = vmatpush.msrb.mxu2 %v1449_v20 }
 0x39f   :  { %1162 = vmatpush.msrb.mxu2 %v1450_v8 }
 0x3a1   :  { %1163 = vmatpush.msrb.mxu2 %v1724_v14 }
 0x410   :  { %v937_v42 = vpop.f32.mrf.mxu0 }
 0x411   :  { %v980_v50 = vadd.f32 %v1814_v53, %v937_v42 }
 0x415   :  { %v897_v7 = vpop.f32.mrf.mxu2  ;;  %v917_v43 = vpop.f32.mrf.mxu3 }
 0x416   :  { %v940_v12 = vadd.f32 %v897_v7, %v189_v11  ;;  %v960_v45 = vadd.f32 %v917_v43, %v230_v54 }
 0x418   :  { %v1324_v15 = vmul.f32 -1.442695, %v940_v12  ;;  %v1325_v18 = vmul.f32 -1.442695, %v960_v45 }
 0x41a   :  { %1397 = vpow2.f32 %v1324_v15 }
 0x41b   :  { %1399 = vpow2.f32 %v1325_v18 }
 0x420   :  { %v1398_v29 = vpop.eup %1397 }
 0x421   :  { %v1400_v32 = vpop.eup %1399  ;;  %v944_v33 = vadd.f32 1.0, %v1398_v29 }
 0x422   :  { %v964_v34 = vadd.f32 1.0, %v1400_v32 }
 0x423   :  { %1401 = vrcp.f32 %v944_v33  ;;  %v956_v6 = vand.u32 2147483648, %v944_v33  ;;  %v954_v39 = vand.u32 2147483647, %v944_v33  ;;  %vm950_vm12 = vweird.f32 %v944_v33 }
 0x424   :  { %1403 = vrcp.f32 %v964_v34  ;;  %v976_v41 = vand.u32 2147483648, %v964_v34  ;;  %vm970_vm0 = vweird.f32 %v964_v34  ;;  %v974_v1 = vand.u32 2147483647, %v964_v34 }
 0x425   :  { %v957_v3 = vor.u32 1.1754944e-38, %v956_v6  ;;  %vm955_vm14 = vcmp.eq.f32.partialorder %v954_v39, 8.507059e+37 }
 0x426   :  { %v977_v23 = vor.u32 1.1754944e-38, %v976_v41  ;;  %vm975_vm2 = vcmp.eq.f32.partialorder %v974_v1, 8.507059e+37 }
 0x429   :  { %v1402_v14 = vpop.eup %1401 }
 0x42a   :  { %v1404_v35 = vpop.eup %1403  ;;  %v946_v49 = vmul.f32 %v1402_v14, %v944_v33  ;;  %vm951_vm11 = vweird.f32 %v1402_v14 }
 0x42b   :  { %v966_v52 = vmul.f32 %v1404_v35, %v964_v34  ;;  %vm952_vm13 = vmor %vm950_vm12, %vm951_vm11  ;;  %vm971_vm15 = vweird.f32 %v1404_v35 }
 0x42c   :  { %v947_v37 = vsub.f32 1.0, %v946_v49  ;;  %vm972_vm1 = vmor %vm970_vm0, %vm971_vm15 }
 0x42d   :  { %v967_v46 = vsub.f32 1.0, %v966_v52 }
 0x42e   :  { %v948_v38 = vmul.f32 %v1402_v14, %v947_v37 }
 0x42f   :  { %v968_v48 = vmul.f32 %v1404_v35, %v967_v46 }
 0x430   :  { %v949_v51 = vadd.f32 %v1402_v14, %v948_v38 }
 0x431   :  { %v969_v59 = vadd.f32 %v1404_v35, %v968_v48 }
 0x432   :  { %v953_v57 = vsel %vm952_vm13, %v1402_v14, %v949_v51  ;;  %v274_v14 = vadd.f32 %v1907_v24, %v1816_v63 }
 0x433   :  { %v958_v55 = vsel %vm955_vm14, %v957_v3, %v953_v57  ;;  %v973_v19 = vsel %vm972_vm1, %v1404_v35, %v969_v59  ;;  %v236_v57 = vadd.f32 %v1864_v9, %v1801_v28  ;;  %v1223_v59 = vld [vmem:[%s2139_s5 + $0x38] sm:$0xff]  ;;  %v1220_v28 = vld [vmem:[%s2139_s5 + $0x20] sm:$0xff] }
 0x434   :  { %v981_v2 = vmul.f32 %v980_v50, %v958_v55  ;;  %v978_v27 = vsel %vm975_vm2, %v977_v23, %v973_v19  ;;  %v195_v55 = vadd.f32 %v1955_v13, %v1799_v26  ;;  %1239 = vmatpush.msrb.mxu3 %v1223_v59  ;;  %v1221_v26 = vld [vmem:[%s2139_s5 + $0x28] sm:$0xff]  ;;  %v1219_v9 = vld [vmem:[%s2139_s5 + $0x18] sm:$0xff]  ;;  %v1218_v13 = vld [vmem:[%s2139_s5 + $0x10] sm:$0xff] }
 0x435   :  { %v984_v17 = vsub.f32 1.0, %v978_v27  ;;  %v986_v58 = vmul.f32 %v978_v27, %v2034_v44  ;;  %v1217_v27 = vld [vmem:[%s2139_s5 + $0x8] sm:$0xff] }
 0x436   :  { %v982_v16 = vadd.f32 %v981_v2, %v271_v61  ;;  %v1253_v59 = vld [vmem:[#allocation5 + $0x8] sm:$0xff] }
 0x438   :  { %1405 = vtanh.f32 %v982_v16  ;;  %v1222_v16 = vld [vmem:[%s2139_s5 + $0x30] sm:$0xff] }
 0x439   :  { %1240 = vmatpush.msrb.mxu3 %v1222_v16  ;;  %v1346_v16 = vld [vmem:[%s2142_s8] ss:$0 sm:$0xff] }
 0x43b   :  { %1241 = vmatpush.msrb.mxu3 %v1221_v26 }
 0x43d   :  { %1242 = vmatpush.msrb.mxu3 %v1220_v28 }
 0x43e   :  { %v1406_v4 = vpop.eup %1405 }
 0x43f   :  { %v985_v22 = vmul.f32 %v1406_v4, %v984_v17  ;;  %1243 = vmatpush.msrb.mxu3 %v1219_v9  ;;  %v1216_v4 = vld [vmem:[%s2139_s5] sm:$0xff] }
 0x441   :  { %v987_v36 = vadd.f32 %v986_v58, %v985_v22  ;;  %1244 = vmatpush.msrb.mxu3 %v1218_v13 }
 0x443   :  { %1326 = vmatmul.msk.f32.vlgmr.msrb.gmra.mxu1 %vm306_vm8, %v987_v36  ;;  %1327 = vmatmul.msk.f32.vlgmr.msra.gmra.mxu2 %vm306_vm8, %v987_v36 }
 0x444   :  { %1328 = vmatmul.msk.f32.vlgmr.msra.gmra.mxu3 %vm306_vm8, %v987_v36 }
 0x445   :  { %1245 = vmatpush.msrb.mxu3 %v1217_v27 }
 0x447   :  { %1246 = vmatpush.msrb.mxu3 %v1216_v4 }
 0x4c0   :  { %v1011_v60 = vpop.f32.mrf.mxu1 }
 0x4c1   :  { %v1054_v40 = vadd.f32 %v1011_v60, %v192_v25  ;;  %v1267_v25 = vld [vmem:[#allocation5 + $0x78] sm:$0xff]  ;;  %v1266_v60 = vld [vmem:[#allocation5 + $0x70] sm:$0xff] }
 0x4c2   :  { %1272 = vmatpush.msrb.mxu0 %v1267_v25 }
 0x4c3   :  { %v1329_v62 = vmul.f32 -1.442695, %v1054_v40  ;;  %v1265_v40 = vld [vmem:[#allocation5 + $0x68] sm:$0xff] }
 0x4c4   :  { %1273 = vmatpush.msrb.mxu0 %v1266_v60 }
 0x4c5   :  { %1407 = vpow2.f32 %v1329_v62  ;;  %v1264_v62 = vld [vmem:[#allocation5 + $0x60] sm:$0xff] }
 0x4c6   :  { %v1031_v31 = vpop.f32.mrf.mxu2  ;;  %1274 = vmatpush.msrb.mxu0 %v1265_v40 }
 0x4c7   :  { %v1074_v0 = vadd.f32 %v1031_v31, %v233_v21  ;;  %v1051_v56 = vpop.f32.mrf.mxu3  ;;  %v1263_v31 = vld [vmem:[#allocation5 + $0x58] sm:$0xff] }
 0x4c8   :  { %v1094_v34 = vadd.f32 %v1814_v53, %v1051_v56  ;;  %1275 = vmatpush.msrb.mxu0 %v1264_v62 }
 0x4c9   :  { %v1330_v44 = vmul.f32 -1.442695, %v1074_v0 }
 0x4ca   :  { %1276 = vmatpush.msrb.mxu0 %v1263_v31 }
 0x4cb   :  { %v1408_v47 = vpop.eup %1407  ;;  %1409 = vpow2.f32 %v1330_v44 }
 0x4cc   :  { %v1058_v5 = vadd.f32 1.0, %v1408_v47 }
 0x4ce   :  { %1411 = vrcp.f32 %v1058_v5  ;;  %v1070_v7 = vand.u32 2147483648, %v1058_v5  ;;  %v1068_v12 = vand.u32 2147483647, %v1058_v5  ;;  %vm1064_vm4 = vweird.f32 %v1058_v5 }
 0x4d0   :  { %v1071_v29 = vor.u32 1.1754944e-38, %v1070_v7  ;;  %vm1069_vm6 = vcmp.eq.f32.partialorder %v1068_v12, 8.507059e+37 }
 0x4d1   :  { %v1410_v20 = vpop.eup %1409 }
 0x4d2   :  { %v1078_v8 = vadd.f32 1.0, %v1410_v20 }
 0x4d4   :  { %v1412_v54 = vpop.eup %1411  ;;  %1413 = vrcp.f32 %v1078_v8  ;;  %v1090_v52 = vand.u32 2147483648, %v1078_v8  ;;  %v1088_v6 = vand.u32 2147483647, %v1078_v8  ;;  %vm1084_vm9 = vweird.f32 %v1078_v8 }
 0x4d5   :  { %v1060_v11 = vmul.f32 %v1412_v54, %v1058_v5  ;;  %vm1065_vm3 = vweird.f32 %v1412_v54  ;;  %v1262_v5 = vld [vmem:[#allocation5 + $0x50] sm:$0xff] }
 0x4d6   :  { %vm1066_vm5 = vmor %vm1064_vm4, %vm1065_vm3  ;;  %v1091_v39 = vor.u32 1.1754944e-38, %v1090_v52  ;;  %vm1089_vm11 = vcmp.eq.f32.partialorder %v1088_v6, 8.507059e+37  ;;  %1277 = vmatpush.msrb.mxu0 %v1262_v5 }
 0x4d7   :  { %v1061_v10 = vsub.f32 1.0, %v1060_v11  ;;  %v1261_v11 = vld [vmem:[#allocation5 + $0x48] sm:$0xff] }
 0x4d8   :  { %1278 = vmatpush.msrb.mxu0 %v1261_v11 }
 0x4d9   :  { %v1062_v43 = vmul.f32 %v1412_v54, %v1061_v10 }
 0x4da   :  { %v1414_v45 = vpop.eup %1413 }
 0x4db   :  { %v1080_v15 = vmul.f32 %v1414_v45, %v1078_v8  ;;  %v1063_v18 = vadd.f32 %v1412_v54, %v1062_v43  ;;  %vm1085_vm7 = vweird.f32 %v1414_v45 }
 0x4dc   :  { %vm1086_vm10 = vmor %vm1084_vm9, %vm1085_vm7 }
 0x4dd   :  { %v1081_v32 = vsub.f32 1.0, %v1080_v15  ;;  %v1067_v33 = vsel %vm1066_vm5, %v1412_v54, %v1063_v18  ;;  %v1259_v18 = vld [vmem:[#allocation5 + $0x38] sm:$0xff] }
 0x4de   :  { %v1072_v35 = vsel %vm1069_vm6, %v1071_v29, %v1067_v33 }
 0x4df   :  { %v1082_v49 = vmul.f32 %v1414_v45, %v1081_v32  ;;  %v1095_v37 = vmul.f32 %v1094_v34, %v1072_v35  ;;  %v1451_v32 = vld [vmem:[%s2138_s4] ss:$0 sm:$0xff]  ;;  %v1258_v35 = vld [vmem:[#allocation5 + $0x30] sm:$0xff] }
 0x4e1   :  { %v1083_v46 = vadd.f32 %v1414_v45, %v1082_v49  ;;  %v1096_v38 = vadd.f32 %v1095_v37, %v274_v14  ;;  %v277_v49 = vadd.f32 %v1909_v30, %v1816_v63 }
 0x4e3   :  { %v1087_v42 = vsel %vm1086_vm10, %v1414_v45, %v1083_v46  ;;  %1415 = vtanh.f32 %v1096_v38  ;;  %v1260_v45 = vld [vmem:[#allocation5 + $0x40] sm:$0xff]  ;;  %v1257_v46 = vld [vmem:[#allocation5 + $0x28] sm:$0xff] }
 0x4e4   :  { %v1092_v48 = vsel %vm1089_vm11, %v1091_v39, %v1087_v42  ;;  %1279 = vmatpush.msrb.mxu0 %v1260_v45 }
 0x4e5   :  { %v1098_v51 = vsub.f32 1.0, %v1092_v48  ;;  %v1100_v50 = vmul.f32 %v1092_v48, %v987_v36 }
 0x4e6   :  { %1280 = vmatpush.msrb.mxu0 %v1259_v18 }
 0x4e8   :  { %1281 = vmatpush.msrb.mxu0 %v1258_v35 }
 0x4e9   :  { %v1416_v53 = vpop.eup %1415 }
 0x4ea   :  { %v1099_v3 = vmul.f32 %v1416_v53, %v1098_v51  ;;  %1282 = vmatpush.msrb.mxu0 %v1257_v46 }
 0x4ec   :  { %v2082_v24 = vadd.f32 %v1100_v50, %v1099_v3  ;;  %v1256_v50 = vld [vmem:[#allocation5 + $0x20] sm:$0xff] }
 0x4ed   :  { %1283 = vmatpush.msrb.mxu0 %v1256_v50 }
 0x4ee   :  { %1331 = vmatmul.msk.f32.vlgmr.msra.gmra.mxu0 %vm306_vm8, %v2082_v24  ;;  %1332 = vmatmul.msk.f32.vlgmr.msra.gmra.mxu1 %vm306_vm8, %v2082_v24 }
 0x4ef   :  { %1333 = vmatmul.msk.f32.vlgmr.msrb.gmra.mxu2 %vm306_vm8, %v2082_v24 }
 0x56b   :  { %v1125_v61 = vpop.f32.mrf.mxu0  ;;  %v1145_v2 = vpop.f32.mrf.mxu1 }
 0x56c   :  { %v1168_v41 = vadd.f32 %v1125_v61, %v195_v55  ;;  %v1188_v1 = vadd.f32 %v1145_v2, %v236_v57  ;;  %v1255_v57 = vld [vmem:[#allocation5 + $0x18] sm:$0xff]  ;;  %v1254_v55 = vld [vmem:[#allocation5 + $0x10] sm:$0xff]  ;;  %v1252_v61 = vld [vmem:[#allocation5] sm:$0xff] }
 0x56d   :  { %1284 = vmatpush.msrb.mxu0 %v1255_v57  ;;  %v1345_v2 = vld [vmem:[%s2140_s6] ss:$0 sm:$0xff] }
 0x56e   :  { %v1334_v19 = vmul.f32 -1.442695, %v1168_v41  ;;  %v1335_v23 = vmul.f32 -1.442695, %v1188_v1 }
 0x56f   :  { %1285 = vmatpush.msrb.mxu0 %v1254_v55 }
 0x570   :  { %1417 = vpow2.f32 %v1334_v19 }
 0x571   :  { %1419 = vpow2.f32 %v1335_v23  ;;  %1286 = vmatpush.msrb.mxu0 %v1253_v59 }
 0x572   :  { %v1165_v12 = vpop.f32.mrf.mxu2 }
 0x573   :  { %v1208_v33 = vadd.f32 %v1451_v32, %v1165_v12  ;;  %1287 = vmatpush.msrb.mxu0 %v1252_v61 }
 0x576   :  { %v1418_v17 = vpop.eup %1417 }
 0x577   :  { %v1420_v22 = vpop.eup %1419  ;;  %v1172_v58 = vadd.f32 1.0, %v1418_v17 }
 0x578   :  { %v1192_v36 = vadd.f32 1.0, %v1420_v22 }
 0x579   :  { %1421 = vrcp.f32 %v1172_v58  ;;  %v1184_v54 = vand.u32 2147483648, %v1172_v58  ;;  %v1182_v7 = vand.u32 2147483647, %v1172_v58  ;;  %vm1178_vm13 = vweird.f32 %v1172_v58 }
 0x57a   :  { %1423 = vrcp.f32 %v1192_v36  ;;  %v1204_v52 = vand.u32 2147483648, %v1192_v36  ;;  %vm1198_vm1 = vweird.f32 %v1192_v36  ;;  %v1202_v6 = vand.u32 2147483647, %v1192_v36 }
 0x57b   :  { %v1185_v15 = vor.u32 1.1754944e-38, %v1184_v54  ;;  %vm1183_vm15 = vcmp.eq.f32.partialorder %v1182_v7, 8.507059e+37 }
 0x57c   :  { %v1205_v42 = vor.u32 1.1754944e-38, %v1204_v52  ;;  %vm1203_vm3 = vcmp.eq.f32.partialorder %v1202_v6, 8.507059e+37 }
 0x57f   :  { %v1422_v21 = vpop.eup %1421 }
 0x580   :  { %v1424_v0 = vpop.eup %1423  ;;  %v1174_v44 = vmul.f32 %v1422_v21, %v1172_v58  ;;  %vm1179_vm12 = vweird.f32 %v1422_v21 }
 0x581   :  { %v1194_v47 = vmul.f32 %v1424_v0, %v1192_v36  ;;  %vm1180_vm14 = vmor %vm1178_vm13, %vm1179_vm12  ;;  %vm1199_vm0 = vweird.f32 %v1424_v0 }
 0x582   :  { %v1175_v20 = vsub.f32 1.0, %v1174_v44  ;;  %vm1200_vm2 = vmor %vm1198_vm1, %vm1199_vm0 }
 0x583   :  { %v1195_v8 = vsub.f32 1.0, %v1194_v47 }
 0x584   :  { %v1176_v10 = vmul.f32 %v1422_v21, %v1175_v20 }
 0x585   :  { %v1196_v43 = vmul.f32 %v1424_v0, %v1195_v8 }
 0x586   :  { %v1177_v56 = vadd.f32 %v1422_v21, %v1176_v10 }
 0x587   :  { %v1197_v34 = vadd.f32 %v1424_v0, %v1196_v43 }
 0x588   :  { %v1181_v29 = vsel %vm1180_vm14, %v1422_v21, %v1177_v56 }
 0x589   :  { %v1186_v14 = vsel %vm1183_vm15, %v1185_v15, %v1181_v29  ;;  %v1201_v39 = vsel %vm1200_vm2, %v1424_v0, %v1197_v34 }
 0x58a   :  { %v1209_v37 = vmul.f32 %v1208_v33, %v1186_v14  ;;  %v1206_v48 = vsel %vm1203_vm3, %v1205_v42, %v1201_v39 }
 0x58b   :  { %v1212_v51 = vsub.f32 1.0, %v1206_v48  ;;  %v1214_v63 = vmul.f32 %v1206_v48, %v2082_v24 }
 0x58c   :  { %v1210_v38 = vadd.f32 %v1209_v37, %v277_v49 }
 0x58e   :  { %1425 = vtanh.f32 %v1210_v38 }
 0x594   :  { %v1426_v53 = vpop.eup %1425 }
 0x595   :  { %v1213_v3 = vmul.f32 %v1426_v53, %v1212_v51 }
 0x597   :  { %v1215_v30 = vadd.f32 %v1214_v63, %v1213_v3 }
 0x599   :  { %1336 = vmatmul.msk.f32.vlgmr.msrb.gmra.mxu3 %vm306_vm8, %v1215_v30 }
 0x61c   :  { %v1248_v41 = vpop.f32.mrf.mxu3 }
 0x61d   :  { %v1249_v1 = vadd.f32 %v1345_v2, %v1248_v41 }
 0x61f   :  { %1427 = vtanh.f32 %v1249_v1 }
 0x625   :  { %v1428_v24 = vpop.eup %1427 }
 0x626   :  { %1288 = vmatmul.f32.vlgmr.msrb.gmra.mxu0 %v1428_v24 }
 0x6a3   :  { %v1289_v19 = vpop.f32.mrf.mxu0 }
 0x6a4   :  { %v1290_v23 = vadd.f32 %v1346_v16, %v1289_v19 }
 0x6a6   :  { %1292 = vst [vmem:[%s2143_s9] sm:$0xff] %v1290_v23 }
 0x6a7   :  { %1297 = vsyncpa [#allocation4], 1 }
 0x6a8   :  { %1298 = vsyncpa [#allocation6], 1 }

</bundles_post_ra>
